<compile_context>
chip_gen: v6e
topology: v6e:2x2x1
jax: 0.10.0
libtpu: 0.0.40
codegen_flags: <defaults>
</compile_context>

<pallas_src>
import math

import jax
import jax.numpy as jnp
from jax import lax
from jax.experimental import pallas as pl
from jax.experimental.pallas import tpu as pltpu


# ---------------------------------------------------------------------------
# Kernel 1: BatchNorm statistics (exact global stats over (N, H, W)).
# Grid: (N,), reduction axis -> "arbitrary".  Emits per-channel scale / shift.
# ---------------------------------------------------------------------------
def _make_bn_stats_kernel(N, C, HW, eps):
    inv_count = 1.0 / float(N * HW)

    def kernel(x_ref, gamma_ref, beta_ref, scale_ref, shift_ref, s1_ref, s2_ref):
        n = pl.program_id(0)

        @pl.when(n == 0)
        def _init():
            s1_ref[...] = jnp.zeros_like(s1_ref)
            s2_ref[...] = jnp.zeros_like(s2_ref)

        x = x_ref[0]                                          # (C, HW) lane-dense
        s1_ref[...] += jnp.sum(x, axis=1, keepdims=True)      # (C, 1)
        s2_ref[...] += jnp.sum(x * x, axis=1, keepdims=True)  # (C, 1)

        @pl.when(n == pl.num_programs(0) - 1)
        def _finalize():
            mean = s1_ref[...] * inv_count
            var = s2_ref[...] * inv_count - mean * mean       # biased batch variance
            scale = gamma_ref[...] * lax.rsqrt(var + eps)
            scale_ref[...] = scale
            shift_ref[...] = beta_ref[...] - mean * scale

    return kernel


# ---------------------------------------------------------------------------
# Kernel 2: fused BN(affine) + ReLU + zero-pad + conv (im2col, one MXU matmul).
# Grid: (N,), "parallel" (independent per image -> both TCs on v7x).
# ---------------------------------------------------------------------------
def _make_conv_kernel(C, H, W, OC, KH, KW, stride, padding, dilation, OH, OW):
    span_h = (OH - 1) * stride + 1
    span_w = (OW - 1) * stride + 1

    def kernel(x_ref, scale_ref, shift_ref, w_ref, o_ref, pad_ref):
        # ---- BN as a single FMA per element + ReLU, lane-dense (C, H*W) ----
        y = jnp.maximum(x_ref[0] * scale_ref[...] + shift_ref[...], 0.0)

        # ---- zero-padded activation written into VMEM scratch ----
        if padding > 0:
            # Scratch persists across grid steps (and is per-core under megacore),
            # so re-zero the (tiny) halo every step rather than gating on step 0.
            pad_ref[...] = jnp.zeros_like(pad_ref)
        pad_ref[:, padding:padding + H, padding:padding + W] = y.reshape(C, H, W)

        # ---- im2col: (KH*KW*C, OH*OW) patches from statically shifted windows ----
        taps = []
        for kh in range(KH):
            for kw in range(KW):
                h0 = kh * dilation
                w0 = kw * dilation
                win = pad_ref[:, h0:h0 + span_h, w0:w0 + span_w]  # (C, span_h, span_w)
                if stride > 1:
                    win = win[:, ::stride, ::stride]
                taps.append(win.reshape(C, OH * OW))
        patches = jnp.concatenate(taps, axis=0)                   # (KH*KW*C, OH*OW)

        # ONE matmul: (OC, KH*KW*C) @ (KH*KW*C, OH*OW) -> (OC, OH*OW).
        # Accumulator/output are lane-dense (last dim OH*OW) -> unmasked full stores.
        o_ref[0] = jnp.dot(w_ref[...], patches,
                           preferred_element_type=jnp.float32).astype(o_ref.dtype)

    return kernel


def basic_conv_forward(x_nchw, gamma, beta, weight_oihw, *,
                       stride=1, padding=0, dilation=1, groups=1, eps=1e-5):
    """BasicConv.forward (BN -> ReLU -> Conv2d, bias=False) for NCHW input."""
    # TODO(synk): grouped / depthwise convolution (groups > 1, used by Transition)
    # is not implemented in the kernel; assert loudly instead of being wrong.
    assert groups == 1
    N, C, H, W = x_nchw.shape
    OC, Cin, KH, KW = weight_oihw.shape
    assert Cin == C
    OH = (H + 2 * padding - dilation * (KH - 1) - 1) // stride + 1
    OW = (W + 2 * padding - dilation * (KW - 1) - 1) // stride + 1
    HW = H * W
    KKC = KH * KW * C
    Hp, Wp = H + 2 * padding, W + 2 * padding

    # Free metadata reshapes; everything stays in (a view of) PyTorch NCHW layout.
    x_slab = x_nchw.reshape(N, C, HW).astype(jnp.float32)          # lane-dense DMA slab
    # w_mat[oc, (kh*KW + kw)*C + c] = weight[oc, c, kh, kw]  (matches im2col row order)
    w_mat = jnp.transpose(weight_oihw, (0, 2, 3, 1)).reshape(OC, KKC).astype(jnp.float32)
    gamma2d = gamma.reshape(C, 1).astype(jnp.float32)
    beta2d = beta.reshape(C, 1).astype(jnp.float32)

    # ---- Pass 1: exact global BN statistics over a reduction grid axis ----
    stats_kernel = _make_bn_stats_kernel(N, C, HW, eps)
    scale, shift = pl.pallas_call(
        stats_kernel,
        out_shape=(jax.ShapeDtypeStruct((C, 1), jnp.float32),
                   jax.ShapeDtypeStruct((C, 1), jnp.float32)),
        grid=(N,),
        in_specs=[pl.BlockSpec((1, C, HW), lambda n: (n, 0, 0)),
                  pl.BlockSpec((C, 1), lambda n: (0, 0)),
                  pl.BlockSpec((C, 1), lambda n: (0, 0))],
        out_specs=(pl.BlockSpec((C, 1), lambda n: (0, 0)),
                   pl.BlockSpec((C, 1), lambda n: (0, 0))),
        scratch_shapes=[pltpu.VMEM((C, 1), jnp.float32),
                        pltpu.VMEM((C, 1), jnp.float32)],
        compiler_params=pltpu.CompilerParams(
            dimension_semantics=("arbitrary",)),   # global reduction: stays sequential
    )(x_slab, gamma2d, beta2d)

    # ---- Pass 2: fused BN + ReLU + pad + conv, one image per grid step ----
    conv_kernel = _make_conv_kernel(C, H, W, OC, KH, KW, stride, padding,
                                    dilation, OH, OW)
    out = pl.pallas_call(
        conv_kernel,
        out_shape=jax.ShapeDtypeStruct((N, OC, OH * OW), jnp.float32),
        grid=(N,),
        in_specs=[pl.BlockSpec((1, C, HW), lambda n: (n, 0, 0)),
                  pl.BlockSpec((C, 1), lambda n: (0, 0)),
                  pl.BlockSpec((C, 1), lambda n: (0, 0)),
                  pl.BlockSpec((OC, KKC), lambda n: (0, 0))],
        out_specs=pl.BlockSpec((1, OC, OH * OW), lambda n: (n, 0, 0)),
        scratch_shapes=[pltpu.VMEM((C, Hp, Wp), jnp.float32)],
        compiler_params=pltpu.CompilerParams(
            dimension_semantics=("parallel",)),    # independent images -> megacore
    )(x_slab, scale, shift, w_mat)

    return out.reshape(N, OC, OH, OW)              # free reshape back to NCHW


def _reference(x_nchw, gamma, beta, w_oihw, stride, padding, dilation, eps):
    """Pure-JAX reference of the same forward (validation only)."""
    mean = jnp.mean(x_nchw, axis=(0, 2, 3), keepdims=True)
    var = jnp.mean((x_nchw - mean) ** 2, axis=(0, 2, 3), keepdims=True)
    y = (x_nchw - mean) / jnp.sqrt(var + eps)
    y = y * gamma.reshape(1, -1, 1, 1) + beta.reshape(1, -1, 1, 1)
    y = jnp.maximum(y, 0.0)
    return lax.conv_general_dilated(
        y, w_oihw,
        window_strides=(stride, stride),
        padding=[(padding, padding), (padding, padding)],
        rhs_dilation=(dilation, dilation),
        dimension_numbers=("NCHW", "OIHW", "NCHW"))


if __name__ == "__main__":
    # Small shapes consistent with BasicConv(in=4, out=8, kernel=3, stride=1, pad=1).
    N, C_in, H, W = 2, 4, 16, 16
    C_out, K = 8, 3
    stride, padding, dilation, groups = 1, 1, 1, 1
    eps = 1e-5

    key = jax.random.PRNGKey(0)
    kx, kw, kg, kb = jax.random.split(key, 4)

    x = jax.random.normal(kx, (N, C_in, H, W), jnp.float32)

    # Deterministic parameter init (shapes / scales as in MSNet._init_weights).
    w_std = math.sqrt(2.0 / (C_out * K * K))
    weight = jax.random.normal(kw, (C_out, C_in, K, K), jnp.float32) * w_std
    gamma = 1.0 + 0.1 * jax.random.normal(kg, (C_in,), jnp.float32)
    beta = 0.1 * jax.random.normal(kb, (C_in,), jnp.float32)

    fwd = jax.jit(lambda x_, g_, b_, w_: basic_conv_forward(
        x_, g_, b_, w_, stride=stride, padding=padding,
        dilation=dilation, groups=groups, eps=eps))

    out = fwd(x, gamma, beta, weight)
    out = jax.block_until_ready(out)

    ref = _reference(x, gamma, beta, weight, stride, padding, dilation, eps)
    assert out.shape == ref.shape == (N, C_out, H, W)
    err = float(jnp.max(jnp.abs(out - ref)))
    assert jnp.allclose(out, ref, atol=2e-4, rtol=2e-4), err

    print("KERNEL_OK")
</pallas_src>

<mosaic_0001>
module attributes {stable_mosaic.version = 11 : i64} {
  func.func @kernel(%arg0: i32, %arg1: memref<1x4x256xf32, #tpu.memory_space<vmem>>, %arg2: memref<4x1xf32, #tpu.memory_space<vmem>>, %arg3: memref<4x1xf32, #tpu.memory_space<vmem>>, %arg4: memref<4x1xf32, #tpu.memory_space<vmem>>, %arg5: memref<4x1xf32, #tpu.memory_space<vmem>>, %arg6: memref<4x1xf32, #tpu.memory_space<vmem>>, %arg7: memref<4x1xf32, #tpu.memory_space<vmem>>) attributes {dimension_semantics = [#tpu.dimension_semantics<arbitrary>], iteration_bounds = array<i64: 2>, scalar_prefetch = 0 : i64, scratch_operands = 2 : i64, tpu.core_type = #tpu.core_type<tc>, window_params = [{transform_indices = @transform_0, window_bounds = array<i64: 1, 4, 256>}, {pipeline_mode = #tpu.pipeline_mode<synchronous>, transform_indices = @transform_1, window_bounds = array<i64: 4, 1>}, {pipeline_mode = #tpu.pipeline_mode<synchronous>, transform_indices = @transform_2, window_bounds = array<i64: 4, 1>}, {pipeline_mode = #tpu.pipeline_mode<synchronous>, transform_indices = @transform_3, window_bounds = array<i64: 4, 1>}, {pipeline_mode = #tpu.pipeline_mode<synchronous>, transform_indices = @transform_4, window_bounds = array<i64: 4, 1>}]} {
    %c0_i32 = arith.constant 0 : i32
    %0 = arith.cmpi eq, %arg0, %c0_i32 : i32
    %1 = arith.extui %0 : i1 to i32
    %c0_i32_0 = arith.constant 0 : i32
    %2 = arith.cmpi ne, %1, %c0_i32_0 : i32
    scf.if %2 {
      %cst_13 = arith.constant 0.000000e+00 : f32
      %19 = vector.broadcast %cst_13 : f32 to vector<4x1xf32>
      %c0_14 = arith.constant 0 : index
      %c0_15 = arith.constant 0 : index
      %20 = vector.load %arg6[%c0_14, %c0_15] : memref<4x1xf32, #tpu.memory_space<vmem>>, vector<4x1xf32>
      tpu.vector_store %arg6[%c0_14, %c0_15], %19 {strides = array<i32>} : memref<4x1xf32, #tpu.memory_space<vmem>>, vector<4x1xf32>,
      %cst_16 = arith.constant 0.000000e+00 : f32
      %21 = vector.broadcast %cst_16 : f32 to vector<4x1xf32>
      %c0_17 = arith.constant 0 : index
      %c0_18 = arith.constant 0 : index
      %22 = vector.load %arg7[%c0_17, %c0_18] : memref<4x1xf32, #tpu.memory_space<vmem>>, vector<4x1xf32>
      tpu.vector_store %arg7[%c0_17, %c0_18], %21 {strides = array<i32>} : memref<4x1xf32, #tpu.memory_space<vmem>>, vector<4x1xf32>,
    } else {
    }
    %c0 = arith.constant 0 : index
    %c0_1 = arith.constant 0 : index
    %c0_2 = arith.constant 0 : index
    %3 = vector.load %arg1[%c0, %c0_1, %c0_2] : memref<1x4x256xf32, #tpu.memory_space<vmem>>, vector<1x4x256xf32>
    %4 = vector.shape_cast %3 : vector<1x4x256xf32> to vector<4x256xf32>
    %c0_3 = arith.constant 0 : index
    %c0_4 = arith.constant 0 : index
    %5 = vector.load %arg6[%c0_3, %c0_4] : memref<4x1xf32, #tpu.memory_space<vmem>>, vector<4x1xf32>
    %cst = arith.constant dense<0.000000e+00> : vector<4xf32>
    %6 = vector.multi_reduction <add>, %4, %cst [1] : vector<4x256xf32> to vector<4xf32>
    %7 = vector.shape_cast %6 : vector<4xf32> to vector<4x1xf32>
    %8 = arith.addf %5, %7 : vector<4x1xf32>
    %c0_5 = arith.constant 0 : index
    %c0_6 = arith.constant 0 : index
    %9 = vector.load %arg6[%c0_5, %c0_6] : memref<4x1xf32, #tpu.memory_space<vmem>>, vector<4x1xf32>
    tpu.vector_store %arg6[%c0_5, %c0_6], %8 {strides = array<i32>} : memref<4x1xf32, #tpu.memory_space<vmem>>, vector<4x1xf32>,
    %c0_7 = arith.constant 0 : index
    %c0_8 = arith.constant 0 : index
    %10 = vector.load %arg7[%c0_7, %c0_8] : memref<4x1xf32, #tpu.memory_space<vmem>>, vector<4x1xf32>
    %11 = arith.mulf %4, %4 : vector<4x256xf32>
    %cst_9 = arith.constant dense<0.000000e+00> : vector<4xf32>
    %12 = vector.multi_reduction <add>, %11, %cst_9 [1] : vector<4x256xf32> to vector<4xf32>
    %13 = vector.shape_cast %12 : vector<4xf32> to vector<4x1xf32>
    %14 = arith.addf %10, %13 : vector<4x1xf32>
    %c0_10 = arith.constant 0 : index
    %c0_11 = arith.constant 0 : index
    %15 = vector.load %arg7[%c0_10, %c0_11] : memref<4x1xf32, #tpu.memory_space<vmem>>, vector<4x1xf32>
    tpu.vector_store %arg7[%c0_10, %c0_11], %14 {strides = array<i32>} : memref<4x1xf32, #tpu.memory_space<vmem>>, vector<4x1xf32>,
    %c1_i32 = arith.constant 1 : i32
    %16 = arith.cmpi eq, %arg0, %c1_i32 : i32
    %17 = arith.extui %16 : i1 to i32
    %c0_i32_12 = arith.constant 0 : i32
    %18 = arith.cmpi ne, %17, %c0_i32_12 : i32
    scf.if %18 {
      %c0_13 = arith.constant 0 : index
      %c0_14 = arith.constant 0 : index
      %19 = vector.load %arg6[%c0_13, %c0_14] : memref<4x1xf32, #tpu.memory_space<vmem>>, vector<4x1xf32>
      %cst_15 = arith.constant 0.001953125 : f32
      %20 = vector.broadcast %cst_15 : f32 to vector<4x1xf32>
      %21 = arith.mulf %19, %20 : vector<4x1xf32>
      %c0_16 = arith.constant 0 : index
      %c0_17 = arith.constant 0 : index
      %22 = vector.load %arg7[%c0_16, %c0_17] : memref<4x1xf32, #tpu.memory_space<vmem>>, vector<4x1xf32>
      %cst_18 = arith.constant 0.001953125 : f32
      %23 = vector.broadcast %cst_18 : f32 to vector<4x1xf32>
      %24 = arith.mulf %22, %23 : vector<4x1xf32>
      %25 = arith.mulf %21, %21 : vector<4x1xf32>
      %26 = arith.subf %24, %25 : vector<4x1xf32>
      %c0_19 = arith.constant 0 : index
      %c0_20 = arith.constant 0 : index
      %27 = vector.load %arg2[%c0_19, %c0_20] : memref<4x1xf32, #tpu.memory_space<vmem>>, vector<4x1xf32>
      %cst_21 = arith.constant 9.99999974E-6 : f32
      %28 = vector.broadcast %cst_21 : f32 to vector<4x1xf32>
      %29 = arith.addf %26, %28 : vector<4x1xf32>
      %30 = math.rsqrt %29 : vector<4x1xf32>
      %31 = arith.mulf %27, %30 : vector<4x1xf32>
      %c0_22 = arith.constant 0 : index
      %c0_23 = arith.constant 0 : index
      %32 = vector.load %arg4[%c0_22, %c0_23] : memref<4x1xf32, #tpu.memory_space<vmem>>, vector<4x1xf32>
      tpu.vector_store %arg4[%c0_22, %c0_23], %31 {strides = array<i32>} : memref<4x1xf32, #tpu.memory_space<vmem>>, vector<4x1xf32>,
      %c0_24 = arith.constant 0 : index
      %c0_25 = arith.constant 0 : index
      %33 = vector.load %arg3[%c0_24, %c0_25] : memref<4x1xf32, #tpu.memory_space<vmem>>, vector<4x1xf32>
      %34 = arith.mulf %21, %31 : vector<4x1xf32>
      %35 = arith.subf %33, %34 : vector<4x1xf32>
      %c0_26 = arith.constant 0 : index
      %c0_27 = arith.constant 0 : index
      %36 = vector.load %arg5[%c0_26, %c0_27] : memref<4x1xf32, #tpu.memory_space<vmem>>, vector<4x1xf32>
      tpu.vector_store %arg5[%c0_26, %c0_27], %35 {strides = array<i32>} : memref<4x1xf32, #tpu.memory_space<vmem>>, vector<4x1xf32>,
    } else {
    }
    return
  }
  func.func @transform_0(%arg0: i32) -> (i32, i32, i32) {
    %c0_i32 = arith.constant 0 : i32
    %c0_i32_0 = arith.constant 0 : i32
    %c0_i32_1 = arith.constant 0 : i32
    return %arg0, %c0_i32, %c0_i32_0 : i32, i32, i32
  }
  func.func @transform_1(%arg0: i32) -> (i32, i32) {
    %c0_i32 = arith.constant 0 : i32
    %c0_i32_0 = arith.constant 0 : i32
    %c0_i32_1 = arith.constant 0 : i32
    return %c0_i32, %c0_i32_0 : i32, i32
  }
  func.func @transform_2(%arg0: i32) -> (i32, i32) {
    %c0_i32 = arith.constant 0 : i32
    %c0_i32_0 = arith.constant 0 : i32
    %c0_i32_1 = arith.constant 0 : i32
    return %c0_i32, %c0_i32_0 : i32, i32
  }
  func.func @transform_3(%arg0: i32) -> (i32, i32) {
    %c0_i32 = arith.constant 0 : i32
    %c0_i32_0 = arith.constant 0 : i32
    %c0_i32_1 = arith.constant 0 : i32
    return %c0_i32, %c0_i32_0 : i32, i32
  }
  func.func @transform_4(%arg0: i32) -> (i32, i32) {
    %c0_i32 = arith.constant 0 : i32
    %c0_i32_0 = arith.constant 0 : i32
    %c0_i32_1 = arith.constant 0 : i32
    return %c0_i32, %c0_i32_0 : i32, i32
  }
}

module attributes {stable_mosaic.version = 11 : i64} {
  func.func @kernel(%arg0: i32, %arg1: memref<1x4x256xf32, #tpu.memory_space<vmem>>, %arg2: memref<4x1xf32, #tpu.memory_space<vmem>>, %arg3: memref<4x1xf32, #tpu.memory_space<vmem>>, %arg4: memref<8x36xf32, #tpu.memory_space<vmem>>, %arg5: memref<1x8x256xf32, #tpu.memory_space<vmem>>, %arg6: memref<4x18x18xf32, #tpu.memory_space<vmem>>) attributes {dimension_semantics = [#tpu.dimension_semantics<parallel>], iteration_bounds = array<i64: 2>, scalar_prefetch = 0 : i64, scratch_operands = 1 : i64, tpu.core_type = #tpu.core_type<tc>, window_params = [{transform_indices = @transform_0, window_bounds = array<i64: 1, 4, 256>}, {pipeline_mode = #tpu.pipeline_mode<synchronous>, transform_indices = @transform_1, window_bounds = array<i64: 4, 1>}, {pipeline_mode = #tpu.pipeline_mode<synchronous>, transform_indices = @transform_2, window_bounds = array<i64: 4, 1>}, {pipeline_mode = #tpu.pipeline_mode<synchronous>, transform_indices = @transform_3, window_bounds = array<i64: 8, 36>}, {transform_indices = @transform_4, window_bounds = array<i64: 1, 8, 256>}]} {
    %c0 = arith.constant 0 : index
    %c0_0 = arith.constant 0 : index
    %c0_1 = arith.constant 0 : index
    %0 = vector.load %arg1[%c0, %c0_0, %c0_1] : memref<1x4x256xf32, #tpu.memory_space<vmem>>, vector<1x4x256xf32>
    %1 = vector.shape_cast %0 : vector<1x4x256xf32> to vector<4x256xf32>
    %c0_2 = arith.constant 0 : index
    %c0_3 = arith.constant 0 : index
    %2 = vector.load %arg2[%c0_2, %c0_3] : memref<4x1xf32, #tpu.memory_space<vmem>>, vector<4x1xf32>
    %3 = vector.broadcast %2 : vector<4x1xf32> to vector<4x256xf32>
    %4 = arith.mulf %1, %3 : vector<4x256xf32>
    %c0_4 = arith.constant 0 : index
    %c0_5 = arith.constant 0 : index
    %5 = vector.load %arg3[%c0_4, %c0_5] : memref<4x1xf32, #tpu.memory_space<vmem>>, vector<4x1xf32>
    %6 = vector.broadcast %5 : vector<4x1xf32> to vector<4x256xf32>
    %7 = arith.addf %4, %6 : vector<4x256xf32>
    %cst = arith.constant 0.000000e+00 : f32
    %8 = vector.broadcast %cst : f32 to vector<4x256xf32>
    %9 = arith.maximumf %7, %8 : vector<4x256xf32>
    %cst_6 = arith.constant 0.000000e+00 : f32
    %10 = vector.broadcast %cst_6 : f32 to vector<4x18x18xf32>
    %c0_7 = arith.constant 0 : index
    %c0_8 = arith.constant 0 : index
    %c0_9 = arith.constant 0 : index
    %11 = vector.load %arg6[%c0_7, %c0_8, %c0_9] : memref<4x18x18xf32, #tpu.memory_space<vmem>>, vector<4x18x18xf32>
    tpu.vector_store %arg6[%c0_7, %c0_8, %c0_9], %10 {strides = array<i32>} : memref<4x18x18xf32, #tpu.memory_space<vmem>>, vector<4x18x18xf32>,
    %12 = vector.shape_cast %9 : vector<4x256xf32> to vector<4x16x16xf32>
    %c0_10 = arith.constant 0 : index
    %c1 = arith.constant 1 : index
    %c1_11 = arith.constant 1 : index
    %13 = vector.load %arg6[%c0_10, %c1, %c1_11] : memref<4x18x18xf32, #tpu.memory_space<vmem>>, vector<4x16x16xf32>
    tpu.vector_store %arg6[%c0_10, %c1, %c1_11], %12 {strides = array<i32>} : memref<4x18x18xf32, #tpu.memory_space<vmem>>, vector<4x16x16xf32>,
    %c0_12 = arith.constant 0 : index
    %c0_13 = arith.constant 0 : index
    %c0_14 = arith.constant 0 : index
    %14 = vector.load %arg6[%c0_12, %c0_13, %c0_14] : memref<4x18x18xf32, #tpu.memory_space<vmem>>, vector<4x16x16xf32>
    %15 = vector.shape_cast %14 : vector<4x16x16xf32> to vector<4x256xf32>
    %c0_15 = arith.constant 0 : index
    %c0_16 = arith.constant 0 : index
    %c1_17 = arith.constant 1 : index
    %16 = vector.load %arg6[%c0_15, %c0_16, %c1_17] : memref<4x18x18xf32, #tpu.memory_space<vmem>>, vector<4x16x16xf32>
    %17 = vector.shape_cast %16 : vector<4x16x16xf32> to vector<4x256xf32>
    %c0_18 = arith.constant 0 : index
    %c0_19 = arith.constant 0 : index
    %c2 = arith.constant 2 : index
    %18 = vector.load %arg6[%c0_18, %c0_19, %c2] : memref<4x18x18xf32, #tpu.memory_space<vmem>>, vector<4x16x16xf32>
    %19 = vector.shape_cast %18 : vector<4x16x16xf32> to vector<4x256xf32>
    %c0_20 = arith.constant 0 : index
    %c1_21 = arith.constant 1 : index
    %c0_22 = arith.constant 0 : index
    %20 = vector.load %arg6[%c0_20, %c1_21, %c0_22] : memref<4x18x18xf32, #tpu.memory_space<vmem>>, vector<4x16x16xf32>
    %21 = vector.shape_cast %20 : vector<4x16x16xf32> to vector<4x256xf32>
    %c0_23 = arith.constant 0 : index
    %c1_24 = arith.constant 1 : index
    %c1_25 = arith.constant 1 : index
    %22 = vector.load %arg6[%c0_23, %c1_24, %c1_25] : memref<4x18x18xf32, #tpu.memory_space<vmem>>, vector<4x16x16xf32>
    %23 = vector.shape_cast %22 : vector<4x16x16xf32> to vector<4x256xf32>
    %c0_26 = arith.constant 0 : index
    %c1_27 = arith.constant 1 : index
    %c2_28 = arith.constant 2 : index
    %24 = vector.load %arg6[%c0_26, %c1_27, %c2_28] : memref<4x18x18xf32, #tpu.memory_space<vmem>>, vector<4x16x16xf32>
    %25 = vector.shape_cast %24 : vector<4x16x16xf32> to vector<4x256xf32>
    %c0_29 = arith.constant 0 : index
    %c2_30 = arith.constant 2 : index
    %c0_31 = arith.constant 0 : index
    %26 = vector.load %arg6[%c0_29, %c2_30, %c0_31] : memref<4x18x18xf32, #tpu.memory_space<vmem>>, vector<4x16x16xf32>
    %27 = vector.shape_cast %26 : vector<4x16x16xf32> to vector<4x256xf32>
    %c0_32 = arith.constant 0 : index
    %c2_33 = arith.constant 2 : index
    %c1_34 = arith.constant 1 : index
    %28 = vector.load %arg6[%c0_32, %c2_33, %c1_34] : memref<4x18x18xf32, #tpu.memory_space<vmem>>, vector<4x16x16xf32>
    %29 = vector.shape_cast %28 : vector<4x16x16xf32> to vector<4x256xf32>
    %c0_35 = arith.constant 0 : index
    %c2_36 = arith.constant 2 : index
    %c2_37 = arith.constant 2 : index
    %30 = vector.load %arg6[%c0_35, %c2_36, %c2_37] : memref<4x18x18xf32, #tpu.memory_space<vmem>>, vector<4x16x16xf32>
    %31 = vector.shape_cast %30 : vector<4x16x16xf32> to vector<4x256xf32>
    %32 = tpu.concatenate %15, %17, %19, %21, %23, %25, %27, %29, %31 in 0 : vector<4x256xf32>, vector<4x256xf32>, vector<4x256xf32>, vector<4x256xf32>, vector<4x256xf32>, vector<4x256xf32>, vector<4x256xf32>, vector<4x256xf32>, vector<4x256xf32> -> vector<36x256xf32>
    %c0_38 = arith.constant 0 : index
    %c0_39 = arith.constant 0 : index
    %33 = vector.load %arg4[%c0_38, %c0_39] : memref<8x36xf32, #tpu.memory_space<vmem>>, vector<8x36xf32>
    %cst_40 = arith.constant dense<0.000000e+00> : vector<8x256xf32>
    %34 = tpu.matmul %33, %32, %cst_40 {dimension_numbers = #tpu.dot_dimension_numbers<[1], [0], [0], [1], [0, 0, 1, 1], [], []>} : vector<8x36xf32>, vector<36x256xf32>, vector<8x256xf32> -> vector<8x256xf32>
    %c0_41 = arith.constant 0 : index
    %c0_42 = arith.constant 0 : index
    %c0_43 = arith.constant 0 : index
    %35 = vector.load %arg5[%c0_41, %c0_42, %c0_43] : memref<1x8x256xf32, #tpu.memory_space<vmem>>, vector<1x8x256xf32>
    %36 = vector.shape_cast %35 : vector<1x8x256xf32> to vector<8x256xf32>
    %37 = vector.shape_cast %34 : vector<8x256xf32> to vector<1x8x256xf32>
    tpu.vector_store %arg5[%c0_41, %c0_42, %c0_43], %37 {strides = array<i32>} : memref<1x8x256xf32, #tpu.memory_space<vmem>>, vector<1x8x256xf32>,
    return
  }
  func.func @transform_0(%arg0: i32) -> (i32, i32, i32) {
    %c0_i32 = arith.constant 0 : i32
    %c0_i32_0 = arith.constant 0 : i32
    %c0_i32_1 = arith.constant 0 : i32
    return %arg0, %c0_i32, %c0_i32_0 : i32, i32, i32
  }
  func.func @transform_1(%arg0: i32) -> (i32, i32) {
    %c0_i32 = arith.constant 0 : i32
    %c0_i32_0 = arith.constant 0 : i32
    %c0_i32_1 = arith.constant 0 : i32
    return %c0_i32, %c0_i32_0 : i32, i32
  }
  func.func @transform_2(%arg0: i32) -> (i32, i32) {
    %c0_i32 = arith.constant 0 : i32
    %c0_i32_0 = arith.constant 0 : i32
    %c0_i32_1 = arith.constant 0 : i32
    return %c0_i32, %c0_i32_0 : i32, i32
  }
  func.func @transform_3(%arg0: i32) -> (i32, i32) {
    %c0_i32 = arith.constant 0 : i32
    %c0_i32_0 = arith.constant 0 : i32
    %c0_i32_1 = arith.constant 0 : i32
    return %c0_i32, %c0_i32_0 : i32, i32
  }
  func.func @transform_4(%arg0: i32) -> (i32, i32, i32) {
    %c0_i32 = arith.constant 0 : i32
    %c0_i32_0 = arith.constant 0 : i32
    %c0_i32_1 = arith.constant 0 : i32
    return %arg0, %c0_i32, %c0_i32_0 : i32, i32, i32
  }
}

</mosaic_0001>

<bundles_post_ra>
// kernel: _lambda_.2
= control target key start
LH: loop header
LB: loop body
LE: loop exit
PB: predicated region body
PF: predicated region fallthrough
CT: control target
= control target key end

     0   :  { %s324_s15 = smov 0   ;;  %s360_s0 = inlined_call_operand.vmem [shape: f32[2,4,256], index: 0, kind: input, shape index: {}]   ;;  %s361_s1 = inlined_call_operand.vmem [shape: f32[4,1], index: 1, kind: input, shape index: {}]   ;;  %s362_s2 = inlined_call_operand.vmem [shape: f32[4,1], index: 2, kind: input, shape index: {}]   ;;  %s363_s3 = inlined_call_operand.vmem [shape: f32[4,1], index: 3, kind: output, shape index: {0}]   ;;  %s364_s4 = inlined_call_operand.vmem [shape: f32[4,1], index: 4, kind: output, shape index: {1}]  }
   0x1 LB: > { %s330_s16 = sadd.s32 4294967295, %s296_s15   ;;  %p270_p0 = scmp.ge.s32.totalorder %s296_s15, 1  ;;  %s296_s15 = sphi %s324_s15, %s15_s15  }
   0x2   : > { %p155_p1 = scmp.lt.s32.totalorder %s296_s15, 3 }
   0x4   : > { %p156_p2 = pnand %p270_p0, %p155_p1 }
   0x5   : > { %p176_p3 = scmp.lt.s32.totalorder (!%p156_p2), %s330_s16, 1  ;;  %p273_p4 = scmp.ne.s32.totalorder (!%p156_p2), %s330_s16, 0 }
   0x6   : > { %159 = sbr.rel (%p156_p2) target bundleno = 204 (0xcc), region = 32 }
   0xb   : > { %s177_s17 = scalar_select %p176_p3, %s330_s16, 1 }
   0xc   : > { %184 = sbr.rel (%p273_p4) target bundleno = 19 (0x13), region = 36 }
   0xd   : > { %s277_s18 = sshll.u32 %s177_s17, 3 }
   0xe   : > { %s180_s21 = scalar_lea.vmem %s360_s0, %s277_s18 }
  0x11   : > { %vm185_vm0 = vcmask 3072   ;;  %v298_v0 = vmov 0.0  }
  0x12   : > { %186 = vst.msk [vmem:[#allocation2] sm:$0xf] %vm185_vm0, %v298_v0  ;;  %187 = vst.msk [vmem:[#allocation3] sm:$0xf] %vm185_vm0, %v298_v0 }
  0x13 PF: > { %v188_v1 = vld [vmem:[%s180_s21] sm:$0xff]  ;;  %vm193_vm1 = vcmask 1043456   ;;  %vm200_vm2 = vcmask 3072   ;;  %p274_p5 = scmp.ne.s32.totalorder %s330_s16, 1 }
  0x14   : > { %v191_v2 = vcombine.high %v188_v1, %v188_v1  ;;  %v194_v3 = vsel %vm193_vm1, %v188_v1, 0.0  ;;  %v203_v4 = vmul.f32 %v188_v1, %v188_v1 }
  0x16   : > { %v195_v5 = vsel %vm193_vm1, %v191_v2, 0.0  ;;  %v205_v6 = vcombine.high %v203_v4, %v203_v4  ;;  %v207_v7 = vsel %vm193_vm1, %v203_v4, 0.0 }
  0x17   : > { %v196_v8 = vadd.f32 %v195_v5, %v194_v3 }
  0x18   : > { %v208_v9 = vsel %vm193_vm1, %v205_v6, 0.0 }
  0x19   : > { %197 = vadd.xlane.f32.xlu0 %v196_v8  ;;  %v209_v10 = vadd.f32 %v208_v9, %v207_v7  ;;  %v189_v11 = vld [vmem:[#allocation2] sm:$0xf]  ;;  %v202_v14 = vld [vmem:[#allocation3] sm:$0xf] }
  0x1d   : > { %210 = vadd.xlane.f32.xlu0 %v209_v10 }
  0xa2   : > { %v198_v12 = vpop.xlane.xlu0 %197 }
  0xa3   : > { %v199_v13 = vadd.f32 %v198_v12, %v189_v11 }
  0xa5   : > { %201 = vst.msk [vmem:[#allocation2] sm:$0xf] %vm200_vm2, %v199_v13  ;;  %217 = sbr.rel (%p274_p5) target bundleno = 204 (0xcc), region = 40 }
  0xa6   : > { %v211_v15 = vpop.xlane.xlu0 %210 }
  0xa7   : > { %v212_v16 = vadd.f32 %v211_v15, %v202_v14 }
  0xa9   : > { %213 = vst.msk [vmem:[#allocation3] sm:$0xf] %vm200_vm2, %v212_v16 }
  0xaa   : > { %v224_v24 = vld [vmem:[%s361_s1] sm:$0xf] }
  0xab   : > { %v229_v27 = vld [vmem:[%s362_s2] sm:$0xf] }
  0xac   : > { %v218_v17 = vld [vmem:[#allocation2] sm:$0xf] }
  0xad   : > { %v219_v19 = vmul.f32 0.001953125, %v218_v17 }
  0xaf   : > { %v222_v21 = vmul.f32 %v219_v19, %v219_v19 }
  0xb0   : > { %v220_v18 = vld [vmem:[#allocation3] sm:$0xf] }
  0xb1   : > { %v221_v20 = vmul.f32 0.001953125, %v220_v18 }
  0xb3   : > { %v223_v22 = vsub.f32 %v221_v20, %v222_v21 }
  0xb5   : > { %v225_v23 = vadd.f32 1e-05, %v223_v22 }
  0xb7   : > { %288 = vrsqrt.f32 %v225_v23 }
  0xc4   : > { %v289_v25 = vpop.eup %288 }
  0xc5   : > { %v227_v26 = vmul.f32 %v289_v25, %v224_v24 }
  0xc7   : > { %228 = vst.msk [vmem:[%s363_s3] sm:$0xf] %vm200_vm2, %v227_v26  ;;  %v230_v28 = vmul.f32 %v227_v26, %v219_v19 }
  0xc9   : > { %v231_v29 = vsub.f32 %v229_v27, %v230_v28 }
  0xcb   : > { %232 = vst.msk [vmem:[%s364_s4] sm:$0xf] %vm200_vm2, %v231_v29 }
  0xcc PF: > { %s15_s15 = sadd.s32 1, %s296_s15  }
  0xcd   : > { %p12_p6 = scmp.ge.s32.totalorder %s15_s15, 4  }
  0xcf   :  { %14 = sbr.rel (!%p12_p6) target bundleno = 1 (0x1), region = 74 }

// kernel: _lambda_.3
= control target key start
LH: loop header
LB: loop body
LE: loop exit
PB: predicated region body
PF: predicated region fallthrough
CT: control target
= control target key end

     0   :  { %s2810_s15 = smov 0   ;;  %s4453_s0 = inlined_call_operand.vmem [shape: f32[2,4,256], index: 0, kind: input, shape index: {}]   ;;  %s4454_s1 = inlined_call_operand.vmem [shape: f32[4,1], index: 1, kind: input, shape index: {}]   ;;  %s4455_s2 = inlined_call_operand.vmem [shape: f32[4,1], index: 2, kind: input, shape index: {}]   ;;  %s4456_s3 = inlined_call_operand.vmem [shape: f32[8,36], index: 3, kind: input, shape index: {}]   ;;  %s4457_s4 = inlined_call_operand.vmem [shape: f32[2,8,256], index: 4, kind: output, shape index: {}]  }
   0x1 LB: > { %s2698_s16 = sadd.s32 4294967295, %s2768_s15   ;;  %p2702_p0 = scmp.ge.s32.totalorder %s2768_s15, 1  ;;  %s2768_s15 = sphi %s2810_s15, %s14_s15  }
   0x2   : > { %p162_p1 = scmp.lt.s32.totalorder %s2768_s15, 3 }
   0x4   : > { %p163_p2 = pnand %p2702_p0, %p162_p1 }
   0x6   : > { %166 = sbr.rel (%p163_p2) target bundleno = 1067 (0x42b), region = 36 }
   0xb   : > { %v199_v0 = vld [vmem:[%s4454_s1] sm:$0xf]  ;;  %v2770_v1 = vmov 0   ;;  %p188_p3 = scmp.lt.s32.totalorder %s2698_s16, 1  ;;  %v2771_v3 = vmov 839922192   ;;  %v207_v5 = vlaneseq }
   0xc   : > { %2741 = vset.pattern.permute.xlu0 %v2770_v1  ;;  %v213_v2 = vld [vmem:[%s4455_s2] sm:$0xf]  ;;  %v205_v4 = vunpack.c.l.s4 %v2771_v3  ;;  %s2772_s25 = smov 80   ;;  %s2773_s26 = smov 112   ;;  %vm228_vm0 = vcmask 146432   ;;  %v4458_v17 = vmov 0.0  }
   0xd   : > { %202 = vperm.xlu0 %2741, %v199_v0   ;;  %s4563_s16 = smov (!%p188_p3, %s2698_s16), 1  ;;  %v2826_v7 = vshrl.u32 %v207_v5, 7  ;;  %s2774_s27 = smov 48   ;;  %233 = vst.msk [vmem:[#allocation2 + $0x18] sm:$0xff] %vm228_vm0, %v4458_v17  ;;  %234 = vst.msk [vmem:[#allocation2 + $0x20] sm:$0xff] %vm228_vm0, %v4458_v17  ;;  %2634 = vmatprep.mubr.f32.mxu0 %v4458_v17  ;;  %vm231_vm1 = vcmask 140288  }
   0xe   : > { %v206_v6 = vunpack.c.0.s8 %v205_v4  ;;  %s2716_s21 = sshll.u32 %s4563_s16, 3  ;;  %s2775_s28 = smov 96   ;;  %229 = vst.msk [vmem:[#allocation2] sm:$0xff] %vm228_vm0, %v4458_v17  ;;  %230 = vst.msk [vmem:[#allocation2 + $0x8] sm:$0xff] %vm228_vm0, %v4458_v17  ;;  %v2780_v18 = vmov 1983009808  }
   0xf   : > { %s192_s24 = scalar_lea.vmem %s4453_s0, %s2716_s21  ;;  %s2776_s29 = smov 16   ;;  %236 = vst.msk [vmem:[#allocation2 + $0x30] sm:$0xff] %vm228_vm0, %v4458_v17  ;;  %237 = vst.msk [vmem:[#allocation2 + $0x38] sm:$0xff] %vm228_vm0, %v4458_v17  ;;  %v282_v19 = vunpack.c.l.s4 %v2780_v18  ;;  %v2781_v25 = vmov 1934713408   ;;  %vm464_vm2 = vcmask 138248  }
  0x10   : > { %v209_v8 = vsub.s32 %v206_v6, %v2826_v7  ;;  %v198_v11 = vld [vmem:[%s192_s24] sm:$0xff]  ;;  %s2777_s30 = smov 64   ;;  %s2778_s5 = smov 32   ;;  %239 = vst.msk [vmem:[#allocation2 + $0x48] sm:$0xff] %vm228_vm0, %v4458_v17  ;;  %240 = vst.msk [vmem:[#allocation2 + $0x50] sm:$0xff] %vm228_vm0, %v4458_v17  ;;  %v299_v26 = vunpack.c.l.s4 %v2781_v25  ;;  %vm673_vm3 = vcmask 130048  }
  0x11   : > { %216 = vperm.xlu0 %2741, %v213_v2   ;;  %v283_v22 = vunpack.c.0.s8 %v282_v19  ;;  %235 = vst.msk [vmem:[#allocation2 + $0x28] sm:$0x3] %vm231_vm1, %v4458_v17  ;;  %232 = vst.msk [vmem:[#allocation2 + $0x10] sm:$0x3] %vm231_vm1, %v4458_v17  ;;  %s2782_s6 = smov 1   ;;  %s2783_s7 = smov 126  }
  0x12   : > { %v300_v32 = vunpack.c.0.s8 %v299_v26  ;;  %238 = vst.msk [vmem:[#allocation2 + $0x40] sm:$0x3] %vm231_vm1, %v4458_v17  ;;  %241 = vst.msk [vmem:[#allocation2 + $0x58] sm:$0x3] %vm231_vm1, %v4458_v17  ;;  %s2784_s8 = smov 127   ;;  %vm675_vm4 = vcmask 261120  }
  0x13   : > { %v2850_v28 = vsub.s32 %v283_v22, %v2826_v7  ;;  %vm677_vm5 = vcmask 392192   ;;  %vm679_vm6 = vcmask 523264   ;;  %vm681_vm7 = vcmask 654336   ;;  %s2717_s11 = sshll.u32 %s4563_s16, 4 }
  0x14   : > { %v2855_v46 = vsub.s32 %v300_v32, %v2826_v7  ;;  %vm683_vm8 = vcmask 785408   ;;  %vm685_vm9 = vcmask 916480   ;;  %vm2550_vm10 = vcmask 1043456   ;;  %s197_s14 = scalar_lea.vmem %s4457_s4, %s2717_s11 }
  0x15   : > { %vm2560_vm11 = vcmask 293888  }
  0x88   : > { %v203_v9 = vpop.permute.xlu0 %202 }
  0x89   : > { %v210_v10 = vrot.slane %v203_v9, %v209_v8 }
  0x8b   : > { %v212_v13 = vmul.f32 %v210_v10, %v198_v11 }
  0x8c   : > { %v217_v12 = vpop.permute.xlu0 %216 }
  0x8d   : > { %v224_v14 = vrot.slane %v217_v12, %v209_v8 }
  0x8f   : > { %v226_v15 = vadd.f32 %v224_v14, %v212_v13 }
  0x91   : > { %v227_v16 = vmax.f32 %v226_v15, 0.0 }
  0x93   : > { %253 = vrot.lane.b32.xlu0 %v227_v16, %s2772_s25  ;;  %245 = vrot.lane.b32.xlu1 %v227_v16, %s2773_s26  ;;  %v243_v40 = vrot.slane %v227_v16, 4 }
  0x97   : > { %261 = vrot.lane.b32.xlu0 %v227_v16, %s2774_s27  ;;  %249 = vrot.lane.b32.xlu1 %v227_v16, %s2775_s28 }
  0x9b   : > { %269 = vrot.lane.b32.xlu0 %v227_v16, %s2776_s29  ;;  %257 = vrot.lane.b32.xlu1 %v227_v16, %s2777_s30 }
  0x9f   : > { %265 = vrot.lane.b32.xlu1 %v227_v16, %s2778_s5 }
 0x105   : > { %v254_v20 = vpop.permute.xlu0 %253  ;;  %v246_v21 = vpop.permute.xlu1 %245 }
 0x106   : > { %v288_v29 = vcombine.low %v246_v21, %v254_v20  ;;  %v255_v37 = vrot.slane %v254_v20, 4  ;;  %v247_v38 = vrot.slane %v246_v21, 4 }
 0x108   : > { %v295_v39 = vrot.slane %v288_v29, %v2850_v28  ;;  %v356_v53 = vcombine.low %v247_v38, %v255_v37 }
 0x109   : > { %v262_v23 = vpop.permute.xlu0 %261  ;;  %v250_v24 = vpop.permute.xlu1 %249 }
 0x10a   : > { %v280_v27 = vcombine.low %v227_v16, %v250_v24  ;;  %v251_v33 = vrot.slane %v250_v24, 4  ;;  %v263_v42 = vrot.slane %v262_v23, 4  ;;  %v363_v62 = vrot.slane %v356_v53, %v2850_v28 }
 0x10c   : > { %v287_v34 = vrot.slane %v280_v27, %v2850_v28  ;;  %v348_v48 = vcombine.low %v243_v40, %v251_v33 }
 0x10d   : > { %v270_v30 = vpop.permute.xlu0 %269  ;;  %v258_v31 = vpop.permute.xlu1 %257 }
 0x10e   : > { %v271_v35 = vrot.slane %v270_v30, 4  ;;  %v322_v36 = vcombine.low %v262_v23, %v270_v30  ;;  %v259_v43 = vrot.slane %v258_v31, 4  ;;  %v296_v47 = vcombine.low %v287_v34, %v295_v39 }
 0x10f   : > { %v297_v57 = vcombine.high %v287_v34, %v295_v39  ;;  %v355_v58 = vrot.slane %v348_v48, %v2850_v28 }
 0x110   : > { %v329_v49 = vrot.slane %v322_v36, %v2850_v28  ;;  %v390_v50 = vcombine.low %v263_v42, %v271_v35  ;;  %v304_v60 = vrot.slane %v296_v47, %v2855_v46 }
 0x111   : > { %v266_v41 = vpop.permute.xlu1 %265  ;;  %v311_v3 = vrot.slane %v297_v57, %v2855_v46  ;;  %v364_v4 = vcombine.low %v355_v58, %v363_v62  ;;  %v365_v10 = vcombine.high %v355_v58, %v363_v62 }
 0x112   : > { %v267_v44 = vrot.slane %v266_v41, 4  ;;  %v314_v45 = vcombine.low %v258_v31, %v266_v41  ;;  %v397_v59 = vrot.slane %v390_v50, %v2850_v28 }
 0x113   : > { %v372_v9 = vrot.slane %v364_v4, %v2855_v46  ;;  %v379_v14 = vrot.slane %v365_v10, %v2855_v46 }
 0x114   : > { %v321_v51 = vrot.slane %v314_v45, %v2850_v28  ;;  %v382_v52 = vcombine.low %v259_v43, %v267_v44 }
 0x116   : > { %v330_v54 = vcombine.low %v321_v51, %v329_v49  ;;  %v331_v55 = vcombine.high %v321_v51, %v329_v49  ;;  %v389_v56 = vrot.slane %v382_v52, %v2850_v28 }
 0x118   : > { %v338_v61 = vrot.slane %v330_v54, %v2855_v46  ;;  %v345_v1 = vrot.slane %v331_v55, %v2855_v46  ;;  %v398_v2 = vcombine.low %v389_v56, %v397_v59  ;;  %v399_v8 = vcombine.high %v389_v56, %v397_v59 }
 0x11a   : > { %v2707_v63 = vcombine.high %v304_v60, %v338_v61  ;;  %v432_v0 = vcombine.low %v304_v60, %v338_v61  ;;  %v2709_v5 = vcombine.high %v311_v3, %v345_v1  ;;  %v436_v6 = vcombine.low %v311_v3, %v345_v1 }
 0x11b   : > { %v406_v7 = vrot.slane %v398_v2, %v2855_v46  ;;  %v413_v13 = vrot.slane %v399_v8, %v2855_v46 }
 0x11c   : > { %444 = vrot.lane.b32.xlu0 %v2707_v63, %s2782_s6  ;;  %440 = vrot.lane.b32.xlu1 %v432_v0, %s2782_s6 }
 0x11d   : > { %v2708_v11 = vcombine.high %v372_v9, %v406_v7  ;;  %v433_v12 = vcombine.low %v372_v9, %v406_v7  ;;  %v2710_v15 = vcombine.high %v379_v14, %v413_v13  ;;  %v437_v16 = vcombine.low %v379_v14, %v413_v13 }
 0x120   : > { %452 = vrot.lane.b32.xlu0 %v2709_v5, %s2782_s6  ;;  %448 = vrot.lane.b32.xlu1 %v436_v6, %s2782_s6 }
 0x124   : > { %446 = vrot.lane.b32.xlu0 %v2708_v11, %s2782_s6  ;;  %442 = vrot.lane.b32.xlu1 %v433_v12, %s2782_s6 }
 0x128   : > { %454 = vrot.lane.b32.xlu0 %v2710_v15, %s2782_s6  ;;  %450 = vrot.lane.b32.xlu1 %v437_v16, %s2782_s6 }
 0x18e   : > { %v445_v18 = vpop.permute.xlu0 %444  ;;  %v441_v19 = vpop.permute.xlu1 %440 }
 0x18f   : > { %467 = vst.msk [vmem:[#allocation2 + $0x19] sm:$0xff] %vm464_vm2, %v445_v18  ;;  %465 = vst.msk [vmem:[#allocation2 + $0x1] sm:$0xff] %vm464_vm2, %v441_v19 }
 0x192   : > { %v453_v20 = vpop.permute.xlu0 %452  ;;  %v449_v21 = vpop.permute.xlu1 %448 }
 0x193   : > { %471 = vst.msk [vmem:[#allocation2 + $0x49] sm:$0xff] %vm464_vm2, %v453_v20  ;;  %469 = vst.msk [vmem:[#allocation2 + $0x31] sm:$0xff] %vm464_vm2, %v449_v21 }
 0x196   : > { %v447_v22 = vpop.permute.xlu0 %446  ;;  %v443_v23 = vpop.permute.xlu1 %442  ;;  %v1162_v24 = vld [vmem:[#allocation2 + $0x1] sm:$0xff]  ;;  %v1164_v25 = vld [vmem:[#allocation2 + $0x19] sm:$0xff] }
 0x197   : > { %468 = vst.msk [vmem:[#allocation2 + $0x21] sm:$0xff] %vm464_vm2, %v447_v22  ;;  %466 = vst.msk [vmem:[#allocation2 + $0x9] sm:$0xff] %vm464_vm2, %v443_v23  ;;  %1614 = vrot.lane.b32.xlu0 %v1162_v24, %s2783_s7  ;;  %1618 = vrot.lane.b32.xlu1 %v1164_v25, %s2783_s7  ;;  %v473_v36 = vld [vmem:[#allocation2] sm:$0xff]  ;;  %v475_v37 = vld [vmem:[#allocation2 + $0x18] sm:$0xff] }
 0x19a   : > { %v455_v26 = vpop.permute.xlu0 %454  ;;  %v451_v27 = vpop.permute.xlu1 %450  ;;  %v1166_v29 = vld [vmem:[#allocation2 + $0x31] sm:$0xff]  ;;  %v1168_v30 = vld [vmem:[#allocation2 + $0x49] sm:$0xff] }
 0x19b   : > { %v2883_v31 = vld [vmem:[#allocation2 + $0x30] sm:$0xff]  ;;  %472 = vst.msk [vmem:[#allocation2 + $0x51] sm:$0xff] %vm464_vm2, %v455_v26  ;;  %470 = vst.msk [vmem:[#allocation2 + $0x39] sm:$0xff] %vm464_vm2, %v451_v27  ;;  %v1170_v32 = vcombine.low %v1162_v24, %v1166_v29  ;;  %v1171_v33 = vcombine.high %v1162_v24, %v1166_v29  ;;  %1622 = vrot.lane.b32.xlu0 %v1166_v29, %s2783_s7  ;;  %v1186_v34 = vcombine.low %v1164_v25, %v1168_v30  ;;  %v479_v38 = vld [vmem:[#allocation2 + $0x48] sm:$0xff] }
 0x19c   : > { %v1187_v35 = vcombine.high %v1164_v25, %v1168_v30  ;;  %1626 = vrot.lane.b32.xlu1 %v1168_v30, %s2783_s7  ;;  %v481_v39 = vcombine.low %v473_v36, %v2883_v31  ;;  %v482_v40 = vcombine.high %v473_v36, %v2883_v31  ;;  %v497_v41 = vcombine.low %v475_v37, %v479_v38 }
 0x19d   : > { %v498_v42 = vcombine.high %v475_v37, %v479_v38  ;;  %v2892_v43 = vrot.slane %v1171_v33, %v2850_v28  ;;  %v2898_v45 = vrot.slane %v1170_v32, %v2850_v28  ;;  %v2901_v47 = vrot.slane %v1186_v34, %v2850_v28 }
 0x19e   : > { %v2895_v44 = vrot.slane %v1187_v35, %v2850_v28  ;;  %v2904_v48 = vrot.slane %v481_v39, %v2850_v28  ;;  %v2907_v49 = vrot.slane %v497_v41, %v2850_v28  ;;  %v2910_v50 = vrot.slane %v482_v40, %v2850_v28  ;;  %v1847_v60 = vld [vmem:[#allocation2 + $0x22] sm:$0xff]  ;;  %v1845_v61 = vld [vmem:[#allocation2 + $0xa] sm:$0xff]  ;;  %v2936_v5 = vld [vmem:[#allocation2 + $0x1a] sm:$0xff] }
 0x19f   : > { %v2913_v51 = vrot.slane %v498_v42, %v2850_v28  ;;  %1384 = vrot.lane.b32.xlu0 %v1162_v24, %s2784_s8  ;;  %v1203_v53 = vcombine.high %v2898_v45, %v2901_v47  ;;  %v1202_v55 = vcombine.low %v2898_v45, %v2901_v47  ;;  %v2938_v6 = vld [vmem:[#allocation2 + $0x2] sm:$0xff] }
 0x1a0   : > { %4482 = vst [vmem:[#allocation3_spill] sm:$0xff] %v2910_v50  ;;  %v1219_v52 = vcombine.high %v2892_v43, %v2895_v44  ;;  %v1218_v54 = vcombine.low %v2892_v43, %v2895_v44  ;;  %1388 = vrot.lane.b32.xlu1 %v1164_v25, %s2784_s8  ;;  %v514_v56 = vcombine.high %v2904_v48, %v2907_v49  ;;  %v3003_v23 = vld [vmem:[#allocation2 + $0x9] sm:$0xff]  ;;  %v3005_v24 = vld [vmem:[#allocation2 + $0x21] sm:$0xff] }
 0x1a1   : > { %4483 = vst [vmem:[#allocation4_spill] sm:$0xff] %v2913_v51  ;;  %v513_v57 = vcombine.low %v2904_v48, %v2907_v49  ;;  %v529_v58 = vcombine.low %v2910_v50, %v2913_v51  ;;  %v3035_v27 = vld [vmem:[#allocation2 + $0x8] sm:$0xff]  ;;  %v1217_v39 = vrot.slane %v1203_v53, %v2855_v46  ;;  %v3129_v43 = vrot.slane %v1202_v55, %v2855_v46 }
 0x1a2   : > { %v1851_v62 = vld [vmem:[#allocation2 + $0x52] sm:$0xff]  ;;  %v1849_v63 = vld [vmem:[#allocation2 + $0x3a] sm:$0xff]  ;;  %v2933_v0 = vld [vmem:[#allocation2 + $0x4a] sm:$0xff]  ;;  %v528_v32 = vrot.slane %v514_v56, %v2855_v46  ;;  %v3067_v33 = vrot.slane %v1219_v52, %v2855_v46  ;;  %v1226_v52 = vrot.slane %v1218_v54, %v2855_v46 }
 0x1a3   : > { %1392 = vrot.lane.b32.xlu0 %v1166_v29, %s2784_s8  ;;  %v1936_v1 = vcombine.low %v1847_v60, %v1851_v62  ;;  %v1937_v2 = vcombine.high %v1847_v60, %v1851_v62  ;;  %v1920_v3 = vcombine.low %v1845_v61, %v1849_v63  ;;  %v1921_v4 = vcombine.high %v1845_v61, %v1849_v63  ;;  %v2940_v7 = vld [vmem:[#allocation2 + $0x32] sm:$0xff]  ;;  %v3037_v29 = vld [vmem:[#allocation2 + $0x20] sm:$0xff] }
 0x1a4   : > { %1396 = vrot.lane.b32.xlu1 %v1168_v30, %s2784_s8  ;;  %v1869_v8 = vcombine.high %v2936_v5, %v2933_v0  ;;  %v1853_v9 = vcombine.high %v2938_v6, %v2940_v7  ;;  %v3011_v25 = vld [vmem:[#allocation2 + $0x39] sm:$0xff]  ;;  %v3013_v26 = vld [vmem:[#allocation2 + $0x51] sm:$0xff]  ;;  %v3073_v34 = vrot.slane %v513_v57, %v2855_v46  ;;  %v1868_v35 = vcombine.low %v2936_v5, %v2933_v0 }
 0x1a5   : > { %v2949_v10 = vrot.slane %v1920_v3, %v2850_v28  ;;  %v2953_v11 = vrot.slane %v1936_v1, %v2850_v28  ;;  %v2956_v12 = vrot.slane %v1921_v4, %v2850_v28  ;;  %v2959_v13 = vrot.slane %v1937_v2, %v2850_v28  ;;  %v3043_v30 = vld [vmem:[#allocation2 + $0x38] sm:$0xff]  ;;  %4485 = vst [vmem:[#allocation6_spill] sm:$0xff] %v3129_v43 }
 0x1a6   : > { %v2964_v15 = vrot.slane %v1853_v9, %v2850_v28  ;;  %v2967_v16 = vrot.slane %v1869_v8, %v2850_v28  ;;  %4484 = vst [vmem:[#allocation5_spill] sm:$0xff] %v3073_v34  ;;  %v3098_v41 = vrot.slane %v1868_v35, %v2850_v28  ;;  %v1254_v42 = vcombine.low %v3005_v24, %v3013_v26 }
 0x1a7   : > { %702 = vrot.lane.b32.xlu0 %v473_v36, %s2784_s8  ;;  %v1953_v14 = vcombine.high %v2949_v10, %v2953_v11  ;;  %v1968_v18 = vcombine.low %v2956_v12, %v2959_v13  ;;  %v1969_v20 = vcombine.high %v2956_v12, %v2959_v13  ;;  %v1952_v22 = vcombine.low %v2949_v10, %v2953_v11 }
 0x1a8   : > { %706 = vrot.lane.b32.xlu1 %v475_v37, %s2784_s8  ;;  %v1900_v19 = vcombine.low %v2964_v15, %v2967_v16  ;;  %v1901_v21 = vcombine.high %v2964_v15, %v2967_v16  ;;  %v1238_v48 = vcombine.low %v3003_v23, %v3011_v25  ;;  %v546_v49 = vcombine.high %v528_v32, %v4458_v17 }
 0x1a9   : > { %v1255_v44 = vcombine.high %v3005_v24, %v3013_v26  ;;  %v1239_v54 = vcombine.high %v3003_v23, %v3011_v25  ;;  %v1234_v55 = vcombine.high %v3129_v43, %v4458_v17  ;;  %v550_v35 = vcombine.high %v3035_v27, %v3043_v30 }
 0x1aa   : > { %v3115_v57 = vrot.slane %v1238_v48, %v2850_v28  ;;  %v3167_v3 = vrot.slane %v1900_v19, %v2855_v46  ;;  %v1236_v16 = vcombine.high %v1226_v52, %v4458_v17 }
 0x1ab   : > { %710 = vrot.lane.b32.xlu0 %v2883_v31, %s2784_s8  ;;  %v1269_v1 = vrot.slane %v1255_v44, %v2850_v28 }
 0x1ac   : > { %714 = vrot.lane.b32.xlu1 %v479_v38, %s2784_s8  ;;  %v1918_v11 = vcombine.high %v3167_v3, %v4458_v17 }
 0x1af   : > { %932 = vrot.lane.b32.xlu0 %v473_v36, %s2783_s7  ;;  %v1852_v36 = vcombine.low %v2938_v6, %v2940_v7 }
 0x1b0   : > { %936 = vrot.lane.b32.xlu1 %v475_v37, %s2783_s7  ;;  %v537_v37 = vrot.slane %v529_v58, %v2855_v46  ;;  %v3118_v58 = vrot.slane %v1254_v42, %v2850_v28 }
 0x1b1   : > { %v3095_v40 = vrot.slane %v1852_v36, %v2850_v28 }
 0x1b2   : > { %v547_v56 = vcombine.high %v537_v37, %v4458_v17 }
 0x1b3   : > { %940 = vrot.lane.b32.xlu0 %v2883_v31, %s2783_s7  ;;  %v3045_v31 = vld [vmem:[#allocation2 + $0x50] sm:$0xff]  ;;  %v1885_v53 = vcombine.high %v3095_v40, %v3098_v41 }
 0x1b4   : > { %944 = vrot.lane.b32.xlu1 %v479_v38, %s2783_s7  ;;  %v545_v38 = vcombine.high %v3073_v34, %v4458_v17  ;;  %v565_v4 = vcombine.low %v3037_v29, %v3045_v31 }
 0x1b7   : > { %2068 = vrot.lane.b32.xlu0 %v1845_v61, %s2784_s8 }
 0x1b8   : > { %2072 = vrot.lane.b32.xlu1 %v1847_v60, %s2784_s8 }
 0x1bb   : > { %2076 = vrot.lane.b32.xlu0 %v1849_v63, %s2784_s8 }
 0x1bc   : > { %2080 = vrot.lane.b32.xlu1 %v1851_v62, %s2784_s8 }
 0x1bf   : > { %2066 = vrot.lane.b32.xlu0 %v2938_v6, %s2784_s8 }
 0x1c0   : > { %2070 = vrot.lane.b32.xlu1 %v2936_v5, %s2784_s8 }
 0x1c3   : > { %2074 = vrot.lane.b32.xlu0 %v2940_v7, %s2784_s8 }
 0x1c4   : > { %2078 = vrot.lane.b32.xlu1 %v2933_v0, %s2784_s8 }
 0x1c7   : > { %2298 = vrot.lane.b32.xlu0 %v1845_v61, %s2783_s7  ;;  %v3139_v61 = vrot.slane %v1953_v14, %v2855_v46  ;;  %v1235_v14 = vcombine.high %v1217_v39, %v4458_v17 }
 0x1c8   : > { %2302 = vrot.lane.b32.xlu1 %v1847_v60, %s2783_s7  ;;  %v3123_v60 = vrot.slane %v1885_v53, %v2855_v46 }
 0x1cb   : > { %2306 = vrot.lane.b32.xlu0 %v1849_v63, %s2783_s7 }
 0x1cc   : > { %2310 = vrot.lane.b32.xlu1 %v1851_v62, %s2783_s7  ;;  %v1271_v62 = vcombine.high %v3115_v57, %v3118_v58 }
 0x1ce   : > { %v3154_v63 = vrot.slane %v1271_v62, %v2855_v46 }
 0x1cf   : > { %1616 = vrot.lane.b32.xlu0 %v3003_v23, %s2783_s7 }
 0x1d0   : > { %1620 = vrot.lane.b32.xlu1 %v3005_v24, %s2783_s7 }
 0x1d3   : > { %1624 = vrot.lane.b32.xlu0 %v3011_v25, %s2783_s7 }
 0x1d4   : > { %1628 = vrot.lane.b32.xlu1 %v3013_v26, %s2783_s7 }
 0x1d7   : > { %2296 = vrot.lane.b32.xlu0 %v2938_v6, %s2783_s7 }
 0x1d8   : > { %2300 = vrot.lane.b32.xlu1 %v2936_v5, %s2783_s7  ;;  %v549_v5 = vcombine.low %v3035_v27, %v3043_v30 }
 0x1db   : > { %2304 = vrot.lane.b32.xlu0 %v2940_v7, %s2783_s7  ;;  %v3179_v7 = vrot.slane %v1968_v18, %v2855_v46  ;;  %v3197_v18 = vrot.slane %v565_v4, %v2850_v28 }
 0x1dc   : > { %2308 = vrot.lane.b32.xlu1 %v2933_v0, %s2783_s7  ;;  %v1253_v0 = vrot.slane %v1239_v54, %v2850_v28 }
 0x1de   : > { %v1286_v8 = vcombine.low %v1253_v0, %v1269_v1  ;;  %v1287_v13 = vcombine.high %v1253_v0, %v1269_v1  ;;  %v1917_v1 = vcombine.high %v3123_v60, %v4458_v17 }
 0x1df   : > { %1386 = vrot.lane.b32.xlu0 %v3003_v23, %s2784_s8 }
 0x1e0   : > { %1390 = vrot.lane.b32.xlu1 %v3005_v24, %s2784_s8  ;;  %v3191_v23 = vrot.slane %v1286_v8, %v2855_v46  ;;  %v3194_v24 = vrot.slane %v549_v5, %v2850_v28  ;;  %v1301_v42 = vrot.slane %v1287_v13, %v2855_v46 }
 0x1e3   : > { %1394 = vrot.lane.b32.xlu0 %v3011_v25, %s2784_s8 }
 0x1e4   : > { %1398 = vrot.lane.b32.xlu1 %v3013_v26, %s2784_s8  ;;  %v3208_v26 = vrot.slane %v1901_v21, %v2855_v46  ;;  %v1884_v21 = vcombine.low %v3095_v40, %v3098_v41  ;;  %v1270_v40 = vcombine.low %v3115_v57, %v3118_v58 }
 0x1e7   : > { %704 = vrot.lane.b32.xlu0 %v3035_v27, %s2784_s8 }
 0x1e8   : > { %708 = vrot.lane.b32.xlu1 %v3037_v29, %s2784_s8 }
 0x1eb   : > { %712 = vrot.lane.b32.xlu0 %v3043_v30, %s2784_s8 }
 0x1ec   : > { %716 = vrot.lane.b32.xlu1 %v3045_v31, %s2784_s8 }
 0x1ef   : > { %934 = vrot.lane.b32.xlu0 %v3035_v27, %s2783_s7 }
 0x1f0   : > { %938 = vrot.lane.b32.xlu1 %v3037_v29, %s2783_s7 }
 0x1f3   : > { %942 = vrot.lane.b32.xlu0 %v3043_v30, %s2783_s7 }
 0x1f4   : > { %946 = vrot.lane.b32.xlu1 %v3045_v31, %s2783_s7 }
 0x1f7   : > { %622 = vrot.lane.b32.xlu0 %v528_v32, %s2778_s5  ;;  %v566_v32 = vcombine.high %v3037_v29, %v3045_v31  ;;  %v1237_v31 = vcombine.high %v3067_v33, %v4458_v17 }
 0x1f8   : > { %1327 = vrot.lane.b32.xlu1 %v3067_v33, %s2775_s28 }
 0x1f9   : > { %v580_v29 = vrot.slane %v566_v32, %v2850_v28 }
 0x1fb   : > { %630 = vrot.lane.b32.xlu0 %v537_v37, %s2777_s30  ;;  %v3220_v37 = vrot.slane %v1969_v20, %v2855_v46  ;;  %v564_v20 = vrot.slane %v550_v35, %v2850_v28 }
 0x1fc   : > { %618 = vrot.lane.b32.xlu1 %v545_v38, %s2776_s29  ;;  %v582_v38 = vcombine.high %v3194_v24, %v3197_v18 }
 0x1fd   : > { %v597_v48 = vcombine.low %v564_v20, %v580_v29  ;;  %v598_v57 = vcombine.high %v564_v20, %v580_v29  ;;  %v1303_v20 = vcombine.high %v3154_v63, %v4458_v17 }
 0x1fe   : > { %v596_v12 = vrot.slane %v582_v38, %v2855_v46 }
 0x1ff   : > { %1311 = vrot.lane.b32.xlu0 %v1217_v39, %s2778_s5  ;;  %v3245_v39 = vrot.slane %v1884_v21, %v2855_v46  ;;  %v3273_v62 = vrot.slane %v598_v57, %v2855_v46  ;;  %v581_v21 = vcombine.low %v3194_v24, %v3197_v18  ;;  %v1986_v57 = vcombine.high %v3179_v7, %v4458_v17 }
 0x200   : > { %626 = vrot.lane.b32.xlu1 %v546_v49, %s2774_s27 }
 0x201   : > { %4486 = vst [vmem:[#allocation7_spill] sm:$0xff] %v3245_v39  ;;  %v1916_v33 = vcombine.high %v3245_v39, %v4458_v17  ;;  %4488 = vst [vmem:[#allocation9_spill] sm:$0xff] %v3273_v62 }
 0x203   : > { %1319 = vrot.lane.b32.xlu0 %v1226_v52, %s2777_s30  ;;  %v3259_v52 = vrot.slane %v1270_v40, %v2855_v46 }
 0x204   : > { %634 = vrot.lane.b32.xlu1 %v547_v56, %s2772_s25  ;;  %v605_v56 = vrot.slane %v597_v48, %v2855_v46 }
 0x205   : > { %4487 = vst [vmem:[#allocation8_spill] sm:$0xff] %v3259_v52  ;;  %v1302_v44 = vcombine.high %v3259_v52, %v4458_v17 }
 0x207   : > { %1993 = vrot.lane.b32.xlu0 %v3123_v60, %s2778_s5  ;;  %v1985_v60 = vcombine.high %v3139_v61, %v4458_v17 }
 0x208   : > { %2021 = vrot.lane.b32.xlu1 %v3139_v61, %s2778_s5 }
 0x209   : > { %v3147_v45 = vpop.permute.xlu0 %1614  ;;  %v3149_v47 = vpop.permute.xlu1 %1618 }
 0x20b   : > { %1307 = vrot.lane.b32.xlu0 %v1234_v55, %s2776_s29  ;;  %v3279_v55 = vrot.slane %v1952_v22, %v2855_v46 }
 0x20c   : > { %1339 = vrot.lane.b32.xlu1 %v3154_v63, %s2778_s5  ;;  %v1305_v63 = vcombine.high %v1301_v42, %v4458_v17 }
 0x20d   : > { %v3161_v2 = vpop.permute.xlu0 %1622  ;;  %v1984_v5 = vcombine.high %v3279_v55, %v4458_v17 }
 0x20e   : > { %v3173_v6 = vpop.permute.xlu1 %1626 }
 0x20f   : > { %2001 = vrot.lane.b32.xlu0 %v3167_v3, %s2777_s30  ;;  %v1638_v3 = vcombine.low %v3147_v45, %v3161_v2  ;;  %v1654_v35 = vcombine.low %v3149_v47, %v3173_v6 }
 0x210   : > { %2029 = vrot.lane.b32.xlu1 %v3179_v7, %s2777_s30 }
 0x211   : > { %v3185_v9 = vpop.permute.xlu0 %1384  ;;  %v3336_v24 = vrot.slane %v1638_v3, %v2850_v28  ;;  %v3339_v18 = vrot.slane %v1654_v35, %v2850_v28 }
 0x212   : > { %v3188_v19 = vpop.permute.xlu1 %1388 }
 0x213   : > { %1315 = vrot.lane.b32.xlu0 %v1235_v14, %s2774_s27 }
 0x214   : > { %1347 = vrot.lane.b32.xlu1 %v3191_v23, %s2777_s30 }
 0x215   : > { %v3202_v25 = vpop.permute.xlu0 %1392 }
 0x216   : > { %v3214_v36 = vpop.permute.xlu1 %1396 }
 0x217   : > { %2009 = vrot.lane.b32.xlu0 %v3208_v26, %s2775_s28  ;;  %v1424_v40 = vcombine.low %v3188_v19, %v3214_v36 }
 0x218   : > { %2037 = vrot.lane.b32.xlu1 %v3220_v37, %s2775_s28 }
 0x219   : > { %v3228_v15 = vpop.permute.xlu0 %702 }
 0x21a   : > { %v3233_v27 = vpop.permute.xlu1 %706 }
 0x21b   : > { %1323 = vrot.lane.b32.xlu0 %v1236_v16, %s2772_s25  ;;  %v614_v16 = vcombine.high %v596_v12, %v4458_v17 }
 0x21c   : > { %650 = vrot.lane.b32.xlu1 %v596_v12, %s2778_s5 }
 0x21d   : > { %v3240_v30 = vpop.permute.xlu0 %710 }
 0x21e   : > { %v3249_v41 = vpop.permute.xlu1 %714 }
 0x21f   : > { %1331 = vrot.lane.b32.xlu0 %v1237_v31, %s2773_s26  ;;  %v1408_v31 = vcombine.low %v3185_v9, %v3202_v25 }
 0x220   : > { %1355 = vrot.lane.b32.xlu1 %v1301_v42, %s2775_s28  ;;  %v1655_v42 = vcombine.high %v3149_v47, %v3173_v6 }
 0x221   : > { %v3254_v49 = vpop.permute.xlu0 %932 }
 0x222   : > { %v3261_v53 = vpop.permute.xlu1 %936 }
 0x223   : > { %1989 = vrot.lane.b32.xlu0 %v1916_v33, %s2776_s29 }
 0x224   : > { %658 = vrot.lane.b32.xlu1 %v605_v56, %s2777_s30 }
 0x225   : > { %v3266_v58 = vpop.permute.xlu0 %940 }
 0x226   : > { %v3270_v54 = vpop.permute.xlu1 %944 }
 0x227   : > { %1335 = vrot.lane.b32.xlu0 %v1302_v44, %s2776_s29  ;;  %v3351_v44 = vrot.slane %v581_v21, %v2855_v46  ;;  %v726_v21 = vcombine.low %v3228_v15, %v3240_v30 }
 0x228   : > { %666 = vrot.lane.b32.xlu1 %v3273_v62, %s2775_s28 }
 0x229   : > { %v3284_v0 = vpop.permute.xlu0 %2068  ;;  %4491 = vst [vmem:[#allocation12_spill] sm:$0xff] %v3351_v44 }
 0x22a   : > { %v3288_v4 = vpop.permute.xlu1 %2072 }
 0x22b   : > { %1997 = vrot.lane.b32.xlu0 %v1917_v1, %s2774_s27  ;;  %v1639_v1 = vcombine.high %v3147_v45, %v3161_v2  ;;  %v1671_v45 = vcombine.high %v3336_v24, %v3339_v18  ;;  %v615_v2 = vcombine.high %v605_v56, %v4458_v17  ;;  %v3389_v56 = vrot.slane %v1655_v42, %v2850_v28 }
 0x22c   : > { %2017 = vrot.lane.b32.xlu1 %v1984_v5, %s2776_s29  ;;  %v1987_v42 = vcombine.high %v3220_v37, %v4458_v17 }
 0x22d   : > { %v3294_v10 = vpop.permute.xlu0 %2076  ;;  %v3386_v35 = vrot.slane %v1639_v1, %v2850_v28 }
 0x22e   : > { %v2158_v22 = vcombine.low %v3284_v0, %v3294_v10  ;;  %v3300_v8 = vpop.permute.xlu1 %2080 }
 0x22f   : > { %v2174_v14 = vcombine.low %v3288_v4, %v3300_v8  ;;  %2005 = vrot.lane.b32.xlu0 %v1918_v11, %s2772_s25  ;;  %v3361_v11 = vrot.slane %v1408_v31, %v2850_v28 }
 0x230   : > { %v3308_v32 = vrot.slane %v2158_v22, %v2850_v28  ;;  %2025 = vrot.lane.b32.xlu1 %v1985_v60, %s2774_s27  ;;  %v3364_v22 = vrot.slane %v1424_v40, %v2850_v28  ;;  %v3401_v40 = vrot.slane %v1671_v45, %v2855_v46 }
 0x231   : > { %v3316_v38 = vrot.slane %v2174_v14, %v2850_v28  ;;  %v3318_v61 = vpop.permute.xlu0 %2066  ;;  %v613_v14 = vcombine.high %v3351_v44, %v4458_v17 }
 0x232   : > { %4489 = vst [vmem:[#allocation10_spill] sm:$0xff] %v3308_v32  ;;  %v3323_v13 = vpop.permute.xlu1 %2070 }
 0x233   : > { %4490 = vst [vmem:[#allocation11_spill] sm:$0xff] %v3316_v38  ;;  %654 = vrot.lane.b32.xlu0 %v614_v16, %s2774_s27  ;;  %v1441_v16 = vcombine.high %v3361_v11, %v3364_v22 }
 0x234   : > { %1343 = vrot.lane.b32.xlu1 %v1303_v20, %s2774_s27  ;;  %v742_v20 = vcombine.low %v3233_v27, %v3249_v41 }
 0x235   : > { %v3342_v12 = vpop.permute.xlu0 %2074 }
 0x236   : > { %v2090_v48 = vcombine.low %v3318_v61, %v3342_v12  ;;  %v3346_v33 = vpop.permute.xlu1 %2078  ;;  %v3432_v37 = vrot.slane %v742_v20, %v2850_v28  ;;  %v957_v20 = vcombine.high %v3254_v49, %v3266_v58 }
 0x237   : > { %v2106_v5 = vcombine.low %v3323_v13, %v3346_v33  ;;  %1359 = vrot.lane.b32.xlu0 %v1305_v63, %s2773_s26  ;;  %v1304_v63 = vcombine.high %v3191_v23, %v4458_v17  ;;  %v1686_v23 = vcombine.low %v3386_v35, %v3389_v56 }
 0x238   : > { %v3367_v7 = vrot.slane %v2090_v48, %v2850_v28  ;;  %2033 = vrot.lane.b32.xlu1 %v1986_v57, %s2772_s25  ;;  %v727_v48 = vcombine.high %v3228_v15, %v3240_v30  ;;  %v743_v57 = vcombine.high %v3233_v27, %v3249_v41  ;;  %v3422_v15 = vrot.slane %v726_v21, %v2850_v28 }
 0x239   : > { %v3374_v60 = vrot.slane %v2106_v5, %v2850_v28  ;;  %v3376_v47 = vpop.permute.xlu0 %2298  ;;  %v3429_v30 = vrot.slane %v1441_v16, %v2855_v46  ;;  %v956_v41 = vcombine.low %v3254_v49, %v3266_v58  ;;  %v3465_v49 = vrot.slane %v1686_v23, %v2855_v46 }
 0x23a   : > { %v3378_v6 = vpop.permute.xlu1 %2302  ;;  %v3447_v16 = vrot.slane %v743_v57, %v2850_v28  ;;  %v1919_v57 = vcombine.high %v3208_v26, %v4458_v17  ;;  %v759_v58 = vcombine.high %v3422_v15, %v3432_v37  ;;  %v971_v26 = vrot.slane %v957_v20, %v2850_v28 }
 0x23b   : > { %662 = vrot.lane.b32.xlu0 %v615_v2, %s2772_s25  ;;  %v972_v2 = vcombine.low %v3261_v53, %v3270_v54 }
 0x23c   : > { %646 = vrot.lane.b32.xlu1 %v613_v14, %s2776_s29  ;;  %v3505_v17 = vrot.slane %v759_v58, %v2855_v46 }
 0x23d   : > { %v3398_v31 = vpop.permute.xlu0 %2306 }
 0x23e   : > { %v2388_v1 = vcombine.low %v3376_v47, %v3398_v31  ;;  %v3411_v5 = vpop.permute.xlu1 %2310 }
 0x23f   : > { %v2404_v45 = vcombine.low %v3378_v6, %v3411_v5  ;;  %1779 = vrot.lane.b32.xlu0 %v3401_v40, %s2778_s5 }
 0x240   : > { %v3425_v27 = vrot.slane %v2388_v1, %v2850_v28  ;;  %1351 = vrot.lane.b32.xlu1 %v1304_v63, %s2772_s25  ;;  %v3444_v1 = vrot.slane %v727_v48, %v2850_v28  ;;  %v973_v63 = vcombine.high %v3261_v53, %v3270_v54  ;;  %v1409_v48 = vcombine.high %v3185_v9, %v3202_v25 }
 0x241   : > { %v3439_v14 = vrot.slane %v2404_v45, %v2850_v28  ;;  %v3441_v21 = vpop.permute.xlu0 %1616  ;;  %v1425_v53 = vcombine.high %v3188_v19, %v3214_v36  ;;  %v3472_v54 = vrot.slane %v956_v41, %v2850_v28  ;;  %v3475_v45 = vrot.slane %v972_v2, %v2850_v28 }
 0x242   : > { %v3453_v59 = vpop.permute.xlu1 %1620  ;;  %v774_v25 = vcombine.low %v3444_v1, %v3447_v16  ;;  %v1423_v41 = vrot.slane %v1409_v48, %v2850_v28  ;;  %v775_v44 = vcombine.high %v3444_v1, %v3447_v16 }
 0x243   : > { %4492 = vst [vmem:[#allocation13_spill] sm:$0xff] %v3439_v14  ;;  %1549 = vrot.lane.b32.xlu0 %v3429_v30, %s2778_s5  ;;  %v1439_v20 = vrot.slane %v1425_v53, %v2850_v28 }
 0x244   : > { %2041 = vrot.lane.b32.xlu1 %v1987_v42, %s2773_s26  ;;  %v987_v42 = vrot.slane %v973_v63, %v2850_v28  ;;  %v989_v63 = vcombine.high %v3472_v54, %v3475_v45 }
 0x245   : > { %v3477_v9 = vpop.permute.xlu0 %1624  ;;  %v1456_v53 = vcombine.low %v1423_v41, %v1439_v20  ;;  %v1457_v43 = vcombine.high %v1423_v41, %v1439_v20  ;;  %v1687_v41 = vcombine.high %v3386_v35, %v3389_v56 }
 0x246   : > { %v1706_v19 = vcombine.low %v3441_v21, %v3477_v9  ;;  %v3485_v36 = vpop.permute.xlu1 %1628  ;;  %v1004_v34 = vcombine.low %v971_v26, %v987_v42  ;;  %v3521_v58 = vrot.slane %v989_v63, %v2855_v46  ;;  %v1005_v1 = vcombine.high %v971_v26, %v987_v42 }
 0x247   : > { %v1722_v23 = vcombine.low %v3453_v59, %v3485_v36  ;;  %1787 = vrot.lane.b32.xlu0 %v3465_v49, %s2777_s30  ;;  %v3547_v63 = vrot.slane %v1456_v53, %v2855_v46  ;;  %v3567_v56 = vrot.slane %v1687_v41, %v2855_v46  ;;  %v3574_v53 = vrot.slane %v775_v44, %v2855_v46 }
 0x248   : > { %v3493_v2 = vrot.slane %v1706_v19, %v2850_v28  ;;  %2013 = vrot.lane.b32.xlu1 %v1919_v57, %s2773_s26  ;;  %v3510_v19 = vrot.slane %v774_v25, %v2855_v46  ;;  %v3528_v57 = vrot.slane %v1004_v34, %v2855_v46  ;;  %v2159_v26 = vcombine.high %v3284_v0, %v3294_v10 }
 0x249   : > { %v3500_v3 = vrot.slane %v1722_v23, %v2850_v28  ;;  %v3502_v29 = vpop.permute.xlu0 %2296  ;;  %v2175_v42 = vcombine.high %v3288_v4, %v3300_v8  ;;  %v2123_v44 = vcombine.high %v3367_v7, %v3374_v60  ;;  %v2421_v0 = vcombine.high %v3425_v27, %v3439_v14 }
 0x24a   : > { %v3507_v48 = vpop.permute.xlu1 %2300  ;;  %v3606_v10 = vrot.slane %v1005_v1, %v2855_v46  ;;  %v2091_v1 = vcombine.high %v3318_v61, %v3342_v12  ;;  %v2389_v8 = vcombine.high %v3376_v47, %v3398_v31  ;;  %v4501_v31 = vmov 0.0  }
 0x24b   : > { %867 = vrot.lane.b32.xlu0 %v3505_v17, %s2778_s5 }
 0x24c   : > { %875 = vrot.lane.b32.xlu1 %v3510_v19, %s2777_s30  ;;  %4497 = vst [vmem:[#allocation18_spill] sm:$0xff] %v3606_v10  ;;  %v3672_v14 = vrot.slane %v2389_v8, %v2850_v28 }
 0x24d   : > { %v3518_v23 = vpop.permute.xlu0 %2304 }
 0x24e   : > { %v2320_v25 = vcombine.low %v3502_v29, %v3518_v23  ;;  %v3525_v62 = vpop.permute.xlu1 %2308 }
 0x24f   : > { %v2336_v51 = vcombine.low %v3507_v48, %v3525_v62  ;;  %1097 = vrot.lane.b32.xlu0 %v3521_v58, %s2778_s5 }
 0x250   : > { %v3535_v50 = vrot.slane %v2320_v25, %v2850_v28  ;;  %1105 = vrot.lane.b32.xlu1 %v3528_v57, %s2777_s30  ;;  %v3554_v25 = vrot.slane %v1457_v43, %v2855_v46 }
 0x251   : > { %v3542_v20 = vrot.slane %v2336_v51, %v2850_v28  ;;  %v3544_v34 = vpop.permute.xlu0 %1386  ;;  %v2191_v51 = vcombine.high %v3308_v32, %v3316_v38 }
 0x252   : > { %4493 = vst [vmem:[#allocation14_spill] sm:$0xff] %v3535_v50  ;;  %v3551_v39 = vpop.permute.xlu1 %1390  ;;  %4495 = vst [vmem:[#allocation16_spill] sm:$0xff] %v3554_v25 }
 0x253   : > { %4494 = vst [vmem:[#allocation15_spill] sm:$0xff] %v3542_v20  ;;  %1557 = vrot.lane.b32.xlu0 %v3547_v63, %s2777_s30 }
 0x254   : > { %1565 = vrot.lane.b32.xlu1 %v3554_v25, %s2775_s28  ;;  %v1670_v25 = vcombine.low %v3336_v24, %v3339_v18  ;;  %v3599_v24 = vrot.slane %v2191_v51, %v2855_v46  ;;  %v3616_v18 = vrot.slane %v2175_v42, %v2850_v28  ;;  %v3632_v42 = vrot.slane %v2123_v44, %v2855_v46 }
 0x255   : > { %v3564_v35 = vpop.permute.xlu0 %1394  ;;  %v3659_v44 = vrot.slane %v2091_v1, %v2850_v28 }
 0x256   : > { %v1476_v43 = vcombine.low %v3544_v34, %v3564_v35  ;;  %v3571_v16 = vpop.permute.xlu1 %1398  ;;  %4496 = vst [vmem:[#allocation17_spill] sm:$0xff] %v3599_v24  ;;  %v3621_v51 = vrot.slane %v1670_v25, %v2855_v46  ;;  %4499 = vst [vmem:[#allocation20_spill] sm:$0xff] %v3632_v42  ;;  %v1739_v25 = vcombine.high %v3493_v2, %v3500_v3 }
 0x257   : > { %v1492_v52 = vcombine.low %v3551_v39, %v3571_v16  ;;  %1795 = vrot.lane.b32.xlu0 %v3567_v56, %s2775_s28 }
 0x258   : > { %v3587_v41 = vrot.slane %v1476_v43, %v2850_v28  ;;  %883 = vrot.lane.b32.xlu1 %v3574_v53, %s2775_s28  ;;  %4498 = vst [vmem:[#allocation19_spill] sm:$0xff] %v3621_v51  ;;  %v2107_v43 = vcombine.high %v3323_v13, %v3346_v33  ;;  %v3643_v13 = vrot.slane %v2421_v0, %v2855_v46 }
 0x259   : > { %v3594_v38 = vrot.slane %v1492_v52, %v2850_v28  ;;  %v3596_v32 = vpop.permute.xlu0 %704  ;;  %v3613_v52 = vrot.slane %v2159_v26, %v2850_v28  ;;  %v3680_v1 = vrot.slane %v1739_v25, %v2855_v46 }
 0x25a   : > { %v3603_v4 = vpop.permute.xlu1 %708  ;;  %4500 = vst [vmem:[#allocation21_spill] sm:$0xff] %v3643_v13  ;;  %v3662_v0 = vrot.slane %v2107_v43, %v2850_v28 }
 0x25b   : > { %2259 = vrot.lane.b32.xlu0 %v3599_v24, %s2778_s5  ;;  %v2206_v47 = vcombine.low %v3613_v52, %v3616_v18  ;;  %4502 = vst [vmem:[#allocation22_spill] sm:$0xff] %v3680_v1 }
 0x25c   : > { %1113 = vrot.lane.b32.xlu1 %v3606_v10, %s2775_s28  ;;  %v2405_v10 = vcombine.high %v3378_v6, %v3411_v5  ;;  %v1702_v5 = vcombine.high %v3621_v51, %v4501_v31 }
 0x25d   : > { %v3629_v26 = vpop.permute.xlu0 %712 }
 0x25e   : > { %v794_v61 = vcombine.low %v3596_v32, %v3629_v26  ;;  %v3640_v12 = vpop.permute.xlu1 %716 }
 0x25f   : > { %v810_v33 = vcombine.low %v3603_v4, %v3640_v12  ;;  %2231 = vrot.lane.b32.xlu0 %v3632_v42, %s2778_s5  ;;  %v2353_v42 = vcombine.high %v3535_v50, %v3542_v20  ;;  %v3694_v20 = vrot.slane %v2206_v47, %v2855_v46 }
 0x260   : > { %v3652_v6 = vrot.slane %v794_v61, %v2850_v28  ;;  %2489 = vrot.lane.b32.xlu1 %v3643_v13, %s2778_s5  ;;  %v3675_v13 = vrot.slane %v2405_v10, %v2850_v28  ;;  %v2138_v10 = vcombine.low %v3659_v44, %v3662_v0 }
 0x261   : > { %v3667_v24 = vrot.slane %v810_v33, %v2850_v28  ;;  %v3669_v61 = vpop.permute.xlu0 %934  ;;  %v1440_v33 = vcombine.low %v3361_v11, %v3364_v22  ;;  %v3697_v25 = vrot.slane %v2353_v42, %v2855_v46  ;;  %v1707_v11 = vcombine.high %v3441_v21, %v3477_v9 }
 0x262   : > { %v3677_v51 = vpop.permute.xlu1 %938  ;;  %v1723_v22 = vcombine.high %v3453_v59, %v3485_v36  ;;  %v2321_v59 = vcombine.high %v3502_v29, %v3518_v23  ;;  %v2337_v9 = vcombine.high %v3507_v48, %v3525_v62  ;;  %v1509_v29 = vcombine.high %v3587_v41, %v3594_v38 }
 0x263   : > { %1775 = vrot.lane.b32.xlu0 %v1702_v5, %s2776_s29  ;;  %4503 = vst [vmem:[#allocation23_spill] sm:$0xff] %v3697_v25  ;;  %v2436_v5 = vcombine.low %v3672_v14, %v3675_v13  ;;  %v3719_v21 = vrot.slane %v1440_v33, %v2855_v46 }
 0x264   : > { %1807 = vrot.lane.b32.xlu1 %v3680_v1, %s2778_s5  ;;  %v3737_v33 = vrot.slane %v1723_v22, %v2850_v28 }
 0x265   : > { %v3691_v8 = vpop.permute.xlu0 %942  ;;  %v3744_v62 = vrot.slane %v2436_v5, %v2855_v46  ;;  %v1472_v5 = vcombine.high %v3719_v21, %v4501_v31 }
 0x266   : > { %v1024_v43 = vcombine.low %v3669_v61, %v3691_v8  ;;  %v3707_v1 = vpop.permute.xlu1 %946 }
 0x267   : > { %v1040_v47 = vcombine.low %v3677_v51, %v3707_v1  ;;  %2461 = vrot.lane.b32.xlu0 %v3697_v25, %s2778_s5  ;;  %v3734_v25 = vrot.slane %v1707_v11, %v2850_v28  ;;  %v3756_v11 = vrot.slane %v2337_v9, %v2850_v28 }
 0x268   : > { %v3714_v42 = vrot.slane %v1024_v43, %v2850_v28  ;;  %2267 = vrot.lane.b32.xlu1 %v3694_v20, %s2777_s30  ;;  %v3731_v43 = vrot.slane %v2138_v10, %v2855_v46  ;;  %v3753_v10 = vrot.slane %v2321_v59, %v2850_v28 }
 0x269   : > { %v3726_v36 = vrot.slane %v1040_v47, %v2850_v28  ;;  %v3728_v50 = vpop.permute.xlu0 %622  ;;  %v1754_v47 = vcombine.low %v3734_v25, %v3737_v33 }
 0x26a   : > { %4504 = vst [vmem:[#allocation24_spill] sm:$0xff] %v3728_v50  ;;  %v3741_v23 = vpop.permute.xlu1 %1327  ;;  %v3767_v50 = vrot.slane %v1509_v29, %v2855_v46  ;;  %v2368_v59 = vcombine.low %v3753_v10, %v3756_v11 }
 0x26b   : > { %4505 = vst [vmem:[#allocation25_spill] sm:$0xff] %v3741_v23  ;;  %2239 = vrot.lane.b32.xlu0 %v3731_v43, %s2777_s30  ;;  %v2207_v23 = vcombine.high %v3613_v52, %v3616_v18  ;;  %v3783_v29 = vrot.slane %v1754_v47, %v2855_v46  ;;  %v2437_v18 = vcombine.high %v3672_v14, %v3675_v13 }
 0x26c   : > { %2497 = vrot.lane.b32.xlu1 %v3744_v62, %s2777_s30  ;;  %v3795_v52 = vrot.slane %v2368_v59, %v2855_v46  ;;  %v1477_v13 = vcombine.high %v3544_v34, %v3564_v35 }
 0x26d   : > { %v3758_v22 = vpop.permute.xlu0 %630 }
 0x26e   : > { %4506 = vst [vmem:[#allocation26_spill] sm:$0xff] %v3758_v22  ;;  %v3764_v48 = vpop.permute.xlu1 %618  ;;  %v1703_v22 = vcombine.high %v3401_v40, %v4501_v31  ;;  %v1491_v35 = vrot.slane %v1477_v13, %v2850_v28 }
 0x26f   : > { %4507 = vst [vmem:[#allocation27_spill] sm:$0xff] %v3764_v48  ;;  %1545 = vrot.lane.b32.xlu0 %v1472_v5, %s2776_s29  ;;  %v758_v5 = vcombine.low %v3422_v15, %v3432_v37  ;;  %v988_v15 = vcombine.low %v3472_v54, %v3475_v45  ;;  %v3827_v45 = vrot.slane %v2437_v18, %v2855_v46 }
 0x270   : > { %1577 = vrot.lane.b32.xlu1 %v3767_v50, %s2778_s5 }
 0x271   : > { %v3774_v9 = vpop.permute.xlu0 %1311  ;;  %v3816_v14 = vrot.slane %v758_v5, %v2855_v46 }
 0x272   : > { %4508 = vst [vmem:[#allocation28_spill] sm:$0xff] %v3774_v9  ;;  %v3780_v48 = vpop.permute.xlu1 %626  ;;  %v2139_v9 = vcombine.high %v3659_v44, %v3662_v0  ;;  %v1493_v0 = vcombine.high %v3551_v39, %v3571_v16  ;;  %v3838_v39 = vrot.slane %v988_v15, %v2855_v46 }
 0x273   : > { %4509 = vst [vmem:[#allocation29_spill] sm:$0xff] %v3780_v48  ;;  %1783 = vrot.lane.b32.xlu0 %v1703_v22, %s2774_s27  ;;  %v3802_v22 = vrot.slane %v2207_v23, %v2855_v46  ;;  %v827_v23 = vcombine.high %v3652_v6, %v3667_v24  ;;  %v790_v34 = vcombine.high %v3816_v14, %v4501_v31 }
 0x274   : > { %1815 = vrot.lane.b32.xlu1 %v3783_v29, %s2777_s30  ;;  %v3813_v44 = vrot.slane %v2139_v9, %v2855_v46  ;;  %4513 = vst [vmem:[#allocation33_spill] sm:$0xff] %v3838_v39  ;;  %v1507_v16 = vrot.slane %v1493_v0, %v2850_v28  ;;  %v1057_v9 = vcombine.high %v3714_v42, %v3726_v36 }
 0x275   : > { %v3792_v40 = vpop.permute.xlu0 %1319  ;;  %v3847_v18 = vrot.slane %v827_v23, %v2855_v46  ;;  %v1020_v15 = vcombine.high %v3838_v39, %v4501_v31  ;;  %v1755_v23 = vcombine.high %v3734_v25, %v3737_v33  ;;  %v2369_v25 = vcombine.high %v3753_v10, %v3756_v11 }
 0x276   : > { %4510 = vst [vmem:[#allocation30_spill] sm:$0xff] %v3792_v40  ;;  %v3799_v47 = vpop.permute.xlu1 %634  ;;  %v1524_v13 = vcombine.low %v1491_v35, %v1507_v16  ;;  %v3859_v48 = vrot.slane %v1057_v9, %v2855_v46  ;;  %v1473_v40 = vcombine.high %v3429_v30, %v4501_v31  ;;  %v811_v9 = vcombine.high %v3603_v4, %v3640_v12 }
 0x277   : > { %4511 = vst [vmem:[#allocation31_spill] sm:$0xff] %v3799_v47  ;;  %2469 = vrot.lane.b32.xlu0 %v3795_v52, %s2777_s30  ;;  %v3889_v4 = vrot.slane %v1755_v23, %v2855_v46  ;;  %v1025_v33 = vcombine.high %v3669_v61, %v3691_v8  ;;  %v791_v10 = vcombine.high %v3505_v17, %v4501_v31 }
 0x278   : > { %2275 = vrot.lane.b32.xlu1 %v3802_v22, %s2775_s28  ;;  %v825_v12 = vrot.slane %v811_v9, %v2850_v28  ;;  %v1021_v17 = vcombine.high %v3521_v58, %v4501_v31 }
 0x279   : > { %v3810_v37 = vpop.permute.xlu0 %1993 }
 0x27a   : > { %v3824_v59 = vpop.permute.xlu1 %2021 }
 0x27b   : > { %2247 = vrot.lane.b32.xlu0 %v3813_v44, %s2775_s28 }
 0x27c   : > { %2505 = vrot.lane.b32.xlu1 %v3827_v45, %s2775_s28 }
 0x27d   : > { %v3833_v54 = vpop.permute.xlu0 %1307 }
 0x27e   : > { %4512 = vst [vmem:[#allocation32_spill] sm:$0xff] %v3833_v54  ;;  %v3844_v5 = vpop.permute.xlu1 %1339  ;;  %v795_v54 = vcombine.high %v3596_v32, %v3629_v26  ;;  %v1704_v32 = vcombine.high %v3465_v49, %v4501_v31 }
 0x27f   : > { %863 = vrot.lane.b32.xlu0 %v790_v34, %s2776_s29 }
 0x280   : > { %895 = vrot.lane.b32.xlu1 %v3847_v18, %s2778_s5  ;;  %v809_v26 = vrot.slane %v795_v54, %v2850_v28  ;;  %v1039_v54 = vrot.slane %v1025_v33, %v2850_v28  ;;  %v1525_v33 = vcombine.high %v1491_v35, %v1507_v16  ;;  %v792_v16 = vcombine.high %v3510_v19, %v4501_v31 }
 0x281   : > { %v3852_v47 = vpop.permute.xlu0 %2001 }
 0x282   : > { %v3856_v0 = vpop.permute.xlu1 %2029  ;;  %v842_v11 = vcombine.low %v809_v26, %v825_v12 }
 0x283   : > { %1093 = vrot.lane.b32.xlu0 %v1020_v15, %s2776_s29  ;;  %v3877_v15 = vrot.slane %v1524_v13, %v2855_v46 }
 0x284   : > { %1125 = vrot.lane.b32.xlu1 %v3859_v48, %s2778_s5 }
 0x285   : > { %v3866_v34 = vpop.permute.xlu0 %1315 }
 0x286   : > { %4514 = vst [vmem:[#allocation34_spill] sm:$0xff] %v3866_v34  ;;  %v3874_v39 = vpop.permute.xlu1 %1347 }
 0x287   : > { %1553 = vrot.lane.b32.xlu0 %v1473_v40, %s2774_s27  ;;  %v1041_v40 = vcombine.high %v3677_v51, %v3707_v1  ;;  %v3911_v51 = vrot.slane %v2369_v25, %v2855_v46 }
 0x288   : > { %1585 = vrot.lane.b32.xlu1 %v3877_v15, %s2777_s30 }
 0x289   : > { %v3884_v30 = vpop.permute.xlu0 %2009  ;;  %v1055_v61 = vrot.slane %v1041_v40, %v2850_v28  ;;  %v3923_v28 = vrot.slane %v842_v11, %v2855_v46  ;;  %v1705_v11 = vcombine.high %v3567_v56, %v4501_v31 }
 0x28a   : > { %v3897_v13 = vpop.permute.xlu1 %2037 }
 0x28b   : > { %1791 = vrot.lane.b32.xlu0 %v1704_v32, %s2772_s25  ;;  %v1072_v23 = vcombine.low %v1039_v54, %v1055_v61  ;;  %v1474_v32 = vcombine.high %v3547_v63, %v4501_v31  ;;  %v3943_v63 = vrot.slane %v1525_v33, %v2855_v46 }
 0x28c   : > { %1823 = vrot.lane.b32.xlu1 %v3889_v4, %s2775_s28 }
 0x28d   : > { %v3902_v49 = vpop.permute.xlu0 %1323  ;;  %v3933_v58 = vrot.slane %v1072_v23, %v2855_v46  ;;  %v1073_v23 = vcombine.high %v1039_v54, %v1055_v61  ;;  %v793_v61 = vcombine.high %v3574_v53, %v4501_v31 }
 0x28e   : > { %4515 = vst [vmem:[#allocation35_spill] sm:$0xff] %v3902_v49  ;;  %v3908_v8 = vpop.permute.xlu1 %650 }
 0x28f   : > { %871 = vrot.lane.b32.xlu0 %v791_v10, %s2774_s27  ;;  %v3961_v33 = vrot.slane %v1073_v23, %v2855_v46 }
 0x290   : > { %2477 = vrot.lane.b32.xlu1 %v3911_v51, %s2775_s28 }
 0x291   : > { %v3916_v1 = vpop.permute.xlu0 %1331 }
 0x292   : > { %4516 = vst [vmem:[#allocation36_spill] sm:$0xff] %v3916_v1  ;;  %v3920_v9 = vpop.permute.xlu1 %1355 }
 0x293   : > { %1101 = vrot.lane.b32.xlu0 %v1021_v17, %s2774_s27  ;;  %v843_v17 = vcombine.high %v809_v26, %v825_v12  ;;  %v1022_v26 = vcombine.high %v3528_v57, %v4501_v31  ;;  %v4518_v57 = vld [vmem:[#allocation10_spill] sm:$0xff] }
 0x294   : > { %903 = vrot.lane.b32.xlu1 %v3923_v28, %s2777_s30 }
 0x295   : > { %v1990_v25 = vpop.permute.xlu0 %1989  ;;  %v3951_v49 = vrot.slane %v843_v17, %v2855_v46 }
 0x296   : > { %v3930_v40 = vpop.permute.xlu1 %658 }
 0x297   : > { %1561 = vrot.lane.b32.xlu0 %v1474_v32, %s2772_s25 }
 0x298   : > { %1133 = vrot.lane.b32.xlu1 %v3933_v58, %s2777_s30 }
 0x299   : > { %v1336_v10 = vpop.permute.xlu0 %1335 }
 0x29a   : > { %v3940_v1 = vpop.permute.xlu1 %666 }
 0x29b   : > { %4517 = vst [vmem:[#allocation37_spill] sm:$0xff] %v3940_v1  ;;  %1799 = vrot.lane.b32.xlu0 %v1705_v11, %s2773_s26  ;;  %v4519_v11 = vld [vmem:[#allocation11_spill] sm:$0xff]  ;;  %v4522_v1 = vcombine.low %v3367_v7, %v3374_v60 }
 0x29c   : > { %1593 = vrot.lane.b32.xlu1 %v3943_v63, %s2775_s28  ;;  %v4520_v17 = vcombine.low %v4518_v57, %v4519_v11 }
 0x29d   : > { %v1998_v35 = vpop.permute.xlu0 %1997  ;;  %v3984_v34 = vrot.slane %v4522_v1, %v2855_v46 }
 0x29e   : > { %v2018_v32 = vpop.permute.xlu1 %2017 }
 0x29f   : > { %879 = vrot.lane.b32.xlu0 %v792_v16, %s2772_s25  ;;  %v2051_v19 = vsel %vm673_vm3, %v3279_v55, %v2018_v32  ;;  %v3974_v16 = vrot.slane %v4520_v17, %v2855_v46  ;;  %v4521_v32 = vld [vmem:[#allocation16_spill] sm:$0xff]  ;;  %v2154_v1 = vcombine.high %v3984_v34, %v4501_v31 }
 0x2a0   : > { %911 = vrot.lane.b32.xlu1 %v3951_v49, %s2775_s28  ;;  %v2052_v55 = vsel %vm675_vm4, %v2051_v19, %v3824_v59  ;;  %v4523_v19 = vcombine.low %v3493_v2, %v3500_v3 }
 0x2a1   : > { %v3956_v56 = vpop.permute.xlu0 %2005  ;;  %v2222_v59 = vcombine.high %v3974_v16, %v4501_v31 }
 0x2a2   : > { %v2026_v12 = vpop.permute.xlu1 %2025  ;;  %v3995_v11 = vrot.slane %v4523_v19, %v2855_v46 }
 0x2a3   : > { %1109 = vrot.lane.b32.xlu0 %v1022_v26, %s2772_s25  ;;  %v1475_v26 = vcombine.high %v4521_v32, %v4501_v31  ;;  %v2053_v53 = vsel %vm677_vm5, %v2052_v55, %v2026_v12  ;;  %v4524_v12 = vld [vmem:[#allocation13_spill] sm:$0xff]  ;;  %v4526_v55 = vld [vmem:[#allocation8_spill] sm:$0xff] }
 0x2a4   : > { %1141 = vrot.lane.b32.xlu1 %v3961_v33, %s2775_s28  ;;  %v2054_v7 = vsel %vm679_vm6, %v2053_v53, %v3856_v0  ;;  %v1369_v32 = vsel %vm673_vm3, %v4526_v55, %v1336_v10  ;;  %v1770_v0 = vcombine.high %v3995_v11, %v4501_v31  ;;  %v4528_v53 = vld [vmem:[#allocation15_spill] sm:$0xff] }
 0x2a5   : > { %v655_v54 = vpop.permute.xlu0 %654 }
 0x2a6   : > { %v1344_v23 = vpop.permute.xlu1 %1343 }
 0x2a7   : > { %887 = vrot.lane.b32.xlu0 %v793_v61, %s2773_s26  ;;  %v4525_v61 = vcombine.low %v3425_v27, %v4524_v12  ;;  %v1370_v12 = vsel %vm675_vm4, %v1369_v32, %v3844_v5 }
 0x2a8   : > { %1569 = vrot.lane.b32.xlu1 %v1475_v26, %s2773_s26  ;;  %v4527_v26 = vld [vmem:[#allocation14_spill] sm:$0xff] }
 0x2a9   : > { %v1360_v57 = vpop.permute.xlu0 %1359  ;;  %v4005_v17 = vrot.slane %v4525_v61, %v2855_v46  ;;  %v4529_v19 = vcombine.low %v4527_v26, %v4528_v53  ;;  %v4531_v61 = vld [vmem:[#allocation12_spill] sm:$0xff] }
 0x2aa   : > { %v2034_v60 = vpop.permute.xlu1 %2033 }
 0x2ab   : > { %v2055_v3 = vsel %vm681_vm7, %v2054_v7, %v2034_v60  ;;  %2255 = vrot.lane.b32.xlu0 %v2222_v59, %s2776_s29  ;;  %v4018_v27 = vrot.slane %v4529_v19, %v2855_v46  ;;  %v2452_v7 = vcombine.high %v4005_v17, %v4501_v31  ;;  %v4530_v59 = vld [vmem:[#allocation7_spill] sm:$0xff] }
 0x2ac   : > { %2227 = vrot.lane.b32.xlu1 %v2154_v1, %s2776_s29  ;;  %v2044_v60 = vsel %vm673_vm3, %v4530_v59, %v1990_v25  ;;  %v1371_v1 = vsel %vm677_vm5, %v1370_v12, %v1344_v23 }
 0x2ad   : > { %v663_v2 = vpop.permute.xlu0 %662  ;;  %v2384_v53 = vcombine.high %v4018_v27, %v4501_v31  ;;  %v2045_v25 = vsel %vm675_vm4, %v2044_v60, %v3810_v37  ;;  %v1372_v23 = vsel %vm679_vm6, %v1371_v1, %v3874_v39 }
 0x2ae   : > { %v647_v10 = vpop.permute.xlu1 %646 }
 0x2af   : > { %v687_v55 = vsel %vm673_vm3, %v4531_v61, %v647_v10  ;;  %1803 = vrot.lane.b32.xlu0 %v1770_v0, %s2776_s29  ;;  %v4532_v0 = vld [vmem:[#allocation17_spill] sm:$0xff] }
 0x2b0   : > { %v688_v26 = vsel %vm675_vm4, %v687_v55, %v3908_v8  ;;  %2485 = vrot.lane.b32.xlu1 %v2452_v7, %s2776_s29  ;;  %v2223_v12 = vcombine.high %v4532_v0, %v4501_v31  ;;  %v4534_v61 = vld [vmem:[#allocation21_spill] sm:$0xff] }
 0x2b1   : > { %v689_v5 = vsel %vm677_vm5, %v688_v26, %v655_v54  ;;  %v4034_v32 = vpop.permute.xlu0 %1779  ;;  %v2046_v54 = vsel %vm677_vm5, %v2045_v25, %v1998_v35  ;;  %v4533_v35 = vld [vmem:[#allocation20_spill] sm:$0xff] }
 0x2b2   : > { %v1352_v19 = vpop.permute.xlu1 %1351  ;;  %v690_v8 = vsel %vm679_vm6, %v689_v5, %v3930_v40  ;;  %v2155_v59 = vcombine.high %v4533_v35, %v4501_v31  ;;  %v2047_v60 = vsel %vm679_vm6, %v2046_v54, %v3852_v47 }
 0x2b3   : > { %v1373_v10 = vsel %vm681_vm7, %v1372_v23, %v1352_v19  ;;  %2457 = vrot.lane.b32.xlu0 %v2384_v53, %s2776_s29  ;;  %v4050_v7 = vsel %vm681_vm7, %v690_v8, %v663_v2  ;;  %v2056_v2 = vsel %vm683_vm8, %v2055_v3, %v3897_v13  ;;  %v2048_v26 = vsel %vm681_vm7, %v2047_v60, %v3956_v56  ;;  %v4536_v13 = vld [vmem:[#allocation23_spill] sm:$0xff] }
 0x2b4   : > { %v1374_v37 = vsel %vm683_vm8, %v1373_v10, %v3920_v9  ;;  %2263 = vrot.lane.b32.xlu1 %v2223_v12, %s2774_s27  ;;  %v2453_v9 = vcombine.high %v4534_v61, %v4501_v31  ;;  %v2385_v3 = vcombine.high %v4536_v13, %v4501_v31  ;;  %v2156_v23 = vcombine.high %v3731_v43, %v4501_v31  ;;  %v4538_v12 = vld [vmem:[#allocation22_spill] sm:$0xff] }
 0x2b5   : > { %v4056_v39 = vsel %vm685_vm9, %v1374_v37, %v1360_v57  ;;  %v4058_v40 = vpop.permute.xlu0 %1549  ;;  %v4535_v57 = vcombine.low %v3587_v41, %v3594_v38  ;;  %v2049_v38 = vsel %vm683_vm8, %v2048_v26, %v3884_v30  ;;  %v4537_v30 = vcombine.low %v3652_v6, %v3667_v24  ;;  %v4541_v26 = vld [vmem:[#allocation4_spill] sm:$0xff] }
 0x2b6   : > { %v2042_v1 = vpop.permute.xlu1 %2041  ;;  %v1771_v8 = vcombine.high %v4538_v12, %v4501_v31  ;;  %v2224_v24 = vcombine.high %v3694_v20, %v4501_v31  ;;  %v2386_v37 = vcombine.high %v3795_v52, %v4501_v31  ;;  %v4539_v60 = vcombine.low %v3714_v42, %v3726_v36 }
 0x2b7   : > { %v4072_v55 = vrot.slane %v4535_v57, %v2855_v46  ;;  %v4077_v5 = vsel %vm685_vm9, %v2056_v2, %v2042_v1  ;;  %2235 = vrot.lane.b32.xlu0 %v2155_v59, %s2774_s27  ;;  %v4102_v19 = vrot.slane %v4537_v30, %v2855_v46  ;;  %v2454_v59 = vcombine.high %v3744_v62, %v4501_v31  ;;  %v4540_v57 = vld [vmem:[#allocation3_spill] sm:$0xff] }
 0x2b8   : > { %2493 = vrot.lane.b32.xlu1 %v2453_v9, %s2774_s27  ;;  %v4132_v2 = vrot.slane %v4539_v60, %v2855_v46  ;;  %v2157_v52 = vcombine.high %v3813_v44, %v4501_v31  ;;  %v2455_v36 = vcombine.high %v3827_v45, %v4501_v31  ;;  %v1541_v9 = vcombine.high %v3767_v50, %v4501_v31 }
 0x2b9   : > { %v4081_v47 = vpop.permute.xlu0 %1787  ;;  %v1540_v53 = vcombine.high %v4072_v55, %v4501_v31  ;;  %v858_v43 = vcombine.high %v4102_v19, %v4501_v31  ;;  %v4542_v13 = vcombine.high %v4540_v57, %v4541_v26  ;;  %v1772_v45 = vcombine.high %v3783_v29, %v4501_v31  ;;  %v4544_v57 = vld [vmem:[#allocation18_spill] sm:$0xff] }
 0x2ba   : > { %v2014_v41 = vpop.permute.xlu1 %2013  ;;  %v1088_v62 = vcombine.high %v4132_v2, %v4501_v31  ;;  %v1023_v26 = vcombine.high %v4544_v57, %v4501_v31 }
 0x2bb   : > { %v4090_v56 = vsel %vm685_vm9, %v2049_v38, %v2014_v41  ;;  %2465 = vrot.lane.b32.xlu0 %v2385_v3, %s2774_s27  ;;  %v544_v3 = vrot.slane %v4542_v13, %v2855_v46  ;;  %v2387_v41 = vcombine.high %v3911_v51, %v4501_v31  ;;  %v2225_v46 = vcombine.high %v3802_v22, %v4501_v31  ;;  %v4545_v13 = vld [vmem:[#allocation9_spill] sm:$0xff] }
 0x2bc   : > { %1573 = vrot.lane.b32.xlu1 %v1540_v53, %s2776_s29  ;;  %v4543_v53 = vld [vmem:[#allocation19_spill] sm:$0xff]  ;;  %v860_v51 = vcombine.high %v3923_v28, %v4501_v31 }
 0x2bd   : > { %v4094_v25 = vpop.permute.xlu0 %867 }
 0x2be   : > { %v4104_v0 = vpop.permute.xlu1 %875 }
 0x2bf   : > { %2243 = vrot.lane.b32.xlu0 %v2156_v23, %s2772_s25 }
 0x2c0   : > { %1811 = vrot.lane.b32.xlu1 %v1771_v8, %s2774_s27 }
 0x2c1   : > { %v4110_v54 = vpop.permute.xlu0 %1097 }
 0x2c2   : > { %v4114_v10 = vpop.permute.xlu1 %1105 }
 0x2c3   : > { %891 = vrot.lane.b32.xlu0 %v858_v43, %s2776_s29  ;;  %v859_v43 = vcombine.high %v3847_v18, %v4501_v31  ;;  %v1543_v18 = vcombine.high %v3943_v63, %v4501_v31 }
 0x2c4   : > { %2271 = vrot.lane.b32.xlu1 %v2224_v24, %s2772_s25 }
 0x2c5   : > { %v4120_v6 = vpop.permute.xlu0 %1557 }
 0x2c6   : > { %v4124_v35 = vpop.permute.xlu1 %1565 }
 0x2c7   : > { %2473 = vrot.lane.b32.xlu0 %v2386_v37, %s2772_s25  ;;  %v1089_v37 = vcombine.high %v3859_v48, %v4501_v31 }
 0x2c8   : > { %2501 = vrot.lane.b32.xlu1 %v2454_v59, %s2772_s25 }
 0x2c9   : > { %v4136_v20 = vpop.permute.xlu0 %1795 }
 0x2ca   : > { %v4140_v1 = vpop.permute.xlu1 %883 }
 0x2cb   : > { %2251 = vrot.lane.b32.xlu0 %v2157_v52, %s2773_s26 }
 0x2cc   : > { %1121 = vrot.lane.b32.xlu1 %v1088_v62, %s2776_s29  ;;  %v861_v62 = vcombine.high %v3951_v49, %v4501_v31 }
 0x2cd   : > { %v4146_v42 = vpop.permute.xlu0 %2259 }
 0x2ce   : > { %v4150_v61 = vpop.permute.xlu1 %1113 }
 0x2cf   : > { %2509 = vrot.lane.b32.xlu0 %v2455_v36, %s2773_s26 }
 0x2d0   : > { %1581 = vrot.lane.b32.xlu1 %v1541_v9, %s2774_s27  ;;  %v1091_v9 = vcombine.high %v3961_v33, %v4501_v31 }
 0x2d1   : > { %v4156_v44 = vpop.permute.xlu0 %2231 }
 0x2d2   : > { %v4162_v38 = vpop.permute.xlu1 %2489 }
 0x2d3   : > { %638 = vrot.lane.b32.xlu0 %v544_v3, %s2775_s28 }
 0x2d4   : > { %1819 = vrot.lane.b32.xlu1 %v1772_v45, %s2772_s25  ;;  %v616_v45 = vcombine.high %v4545_v13, %v4501_v31 }
 0x2d5   : > { %v1776_v50 = vpop.permute.xlu0 %1775 }
 0x2d6   : > { %v1830_v23 = vsel %vm673_vm3, %v4543_v53, %v1776_v50  ;;  %v4172_v30 = vpop.permute.xlu1 %1807 }
 0x2d7   : > { %2481 = vrot.lane.b32.xlu0 %v2387_v41, %s2773_s26  ;;  %v1831_v29 = vsel %vm675_vm4, %v1830_v23, %v4034_v32  ;;  %v1090_v32 = vcombine.high %v3933_v58, %v4501_v31  ;;  %v1542_v58 = vcombine.high %v3877_v15, %v4501_v31 }
 0x2d8   : > { %2279 = vrot.lane.b32.xlu1 %v2225_v46, %s2773_s26 }
 0x2d9   : > { %v4180_v12 = vpop.permute.xlu0 %2461 }
 0x2da   : > { %v4184_v8 = vpop.permute.xlu1 %2267 }
 0x2db   : > { %907 = vrot.lane.b32.xlu0 %v860_v51, %s2772_s25 }
 0x2dc   : > { %899 = vrot.lane.b32.xlu1 %v859_v43, %s2774_s27 }
 0x2dd   : > { %v4190_v22 = vpop.permute.xlu0 %2239 }
 0x2de   : > { %v4194_v24 = vpop.permute.xlu1 %2497 }
 0x2df   : > { %1137 = vrot.lane.b32.xlu0 %v1090_v32, %s2772_s25 }
 0x2e0   : > { %1129 = vrot.lane.b32.xlu1 %v1089_v37, %s2774_s27 }
 0x2e1   : > { %v1546_v28 = vpop.permute.xlu0 %1545 }
 0x2e2   : > { %v1600_v59 = vsel %vm673_vm3, %v3719_v21, %v1546_v28  ;;  %v4204_v60 = vpop.permute.xlu1 %1577  ;;  %v1773_v21 = vcombine.high %v3889_v4, %v4501_v31 }
 0x2e3   : > { %1597 = vrot.lane.b32.xlu0 %v1543_v18, %s2773_s26  ;;  %v1601_v48 = vsel %vm675_vm4, %v1600_v59, %v4058_v40 }
 0x2e4   : > { %1589 = vrot.lane.b32.xlu1 %v1542_v58, %s2772_s25 }
 0x2e5   : > { %v1784_v52 = vpop.permute.xlu0 %1783 }
 0x2e6   : > { %v1832_v63 = vsel %vm677_vm5, %v1831_v29, %v1784_v52  ;;  %v4215_v36 = vpop.permute.xlu1 %1815 }
 0x2e7   : > { %915 = vrot.lane.b32.xlu0 %v861_v62, %s2773_s26  ;;  %v1833_v15 = vsel %vm679_vm6, %v1832_v63, %v4081_v47  ;;  %v548_v47 = vcombine.high %v544_v3, %v4501_v31  ;;  %v4546_v3 = vld [vmem:[#allocation33_spill] sm:$0xff] }
 0x2e8   : > { %1827 = vrot.lane.b32.xlu1 %v1773_v21, %s2773_s26 }
 0x2e9   : > { %v4223_v40 = vpop.permute.xlu0 %2469 }
 0x2ea   : > { %v4227_v49 = vpop.permute.xlu1 %2275 }
 0x2eb   : > { %1145 = vrot.lane.b32.xlu0 %v1091_v9, %s2773_s26 }
 0x2ec   : > { %1117 = vrot.lane.b32.xlu1 %v1023_v26, %s2773_s26 }
 0x2ed   : > { %v4233_v4 = vpop.permute.xlu0 %2247 }
 0x2ee   : > { %v4238_v50 = vpop.permute.xlu1 %2505 }
 0x2ef   : > { %642 = vrot.lane.b32.xlu0 %v548_v47, %s2773_s26 }
 0x2f0   : > { %670 = vrot.lane.b32.xlu1 %v616_v45, %s2773_s26 }
 0x2f1   : > { %v864_v33 = vpop.permute.xlu0 %863 }
 0x2f2   : > { %v918_v41 = vsel %vm673_vm3, %v3816_v14, %v864_v33  ;;  %v4244_v53 = vpop.permute.xlu1 %895 }
 0x2f3   : > { %v919_v23 = vsel %vm675_vm4, %v918_v41, %v4094_v25 }
 0x2f5   : > { %v1094_v46 = vpop.permute.xlu0 %1093 }
 0x2f6   : > { %v1148_v29 = vsel %vm673_vm3, %v4546_v3, %v1094_v46  ;;  %v4250_v31 = vpop.permute.xlu1 %1125 }
 0x2f7   : > { %v1149_v51 = vsel %vm675_vm4, %v1148_v29, %v4110_v54 }
 0x2f9   : > { %v1554_v43 = vpop.permute.xlu0 %1553 }
 0x2fa   : > { %v1602_v32 = vsel %vm677_vm5, %v1601_v48, %v1554_v43  ;;  %v4255_v37 = vpop.permute.xlu1 %1585 }
 0x2fb   : > { %v1603_v14 = vsel %vm679_vm6, %v1602_v32, %v4120_v6 }
 0x2fd   : > { %v1792_v28 = vpop.permute.xlu0 %1791 }
 0x2fe   : > { %v1834_v25 = vsel %vm681_vm7, %v1833_v15, %v1792_v28  ;;  %v4260_v18 = vpop.permute.xlu1 %1823 }
 0x2ff   : > { %v1835_v59 = vsel %vm683_vm8, %v1834_v25, %v4136_v20 }
 0x301   : > { %v872_v58 = vpop.permute.xlu0 %871 }
 0x302   : > { %v920_v52 = vsel %vm677_vm5, %v919_v23, %v872_v58  ;;  %v4265_v54 = vpop.permute.xlu1 %2477 }
 0x303   : > { %v921_v47 = vsel %vm679_vm6, %v920_v52, %v4104_v0 }
 0x305   : > { %v1102_v62 = vpop.permute.xlu0 %1101 }
 0x306   : > { %v1150_v48 = vsel %vm677_vm5, %v1149_v51, %v1102_v62  ;;  %v4268_v63 = vpop.permute.xlu1 %903 }
 0x307   : > { %v1151_v41 = vsel %vm679_vm6, %v1150_v48, %v4114_v10 }
 0x309   : > { %v1562_v21 = vpop.permute.xlu0 %1561 }
 0x30a   : > { %v1604_v6 = vsel %vm681_vm7, %v1603_v14, %v1562_v21  ;;  %v4271_v9 = vpop.permute.xlu1 %1133 }
 0x30b   : > { %v1605_v43 = vsel %vm683_vm8, %v1604_v6, %v4124_v35 }
 0x30d   : > { %v1800_v15 = vpop.permute.xlu0 %1799 }
 0x30e   : > { %v1836_v57 = vsel %vm685_vm9, %v1835_v59, %v1800_v15  ;;  %v4274_v26 = vpop.permute.xlu1 %1593 }
 0x30f   : > { %v2540_v51 = vrot.slane %v1836_v57, 4 }
 0x311   : > { %v880_v20 = vpop.permute.xlu0 %879 }
 0x312   : > { %v922_v13 = vsel %vm681_vm7, %v921_v47, %v880_v20  ;;  %v4279_v45 = vpop.permute.xlu1 %911 }
 0x313   : > { %v923_v29 = vsel %vm683_vm8, %v922_v13, %v4140_v1 }
 0x315   : > { %v1110_v33 = vpop.permute.xlu0 %1109 }
 0x316   : > { %v4284_v23 = vsel %vm681_vm7, %v1151_v41, %v1110_v33  ;;  %v4286_v46 = vpop.permute.xlu1 %1141 }
 0x319   : > { %v888_v3 = vpop.permute.xlu0 %887 }
 0x31a   : > { %v4291_v0 = vsel %vm685_vm9, %v923_v29, %v888_v3  ;;  %v1570_v32 = vpop.permute.xlu1 %1569 }
 0x31b   : > { %v1606_v10 = vsel %vm685_vm9, %v1605_v43, %v1570_v32 }
 0x31c   : > { %v4297_v14 = vsel %vm2550_vm10, %v1606_v10, %v2540_v51 }
 0x31d   : > { %v2256_v28 = vpop.permute.xlu0 %2255 }
 0x31e   : > { %v2228_v25 = vpop.permute.xlu1 %2227 }
 0x31f   : > { %v2282_v29 = vsel %vm673_vm3, %v3984_v34, %v2228_v25 }
 0x321   : > { %v1804_v59 = vpop.permute.xlu0 %1803 }
 0x322   : > { %v2486_v58 = vpop.permute.xlu1 %2485 }
 0x323   : > { %v2519_v6 = vsel %vm673_vm3, %v4005_v17, %v2486_v58  ;;  %v2283_v58 = vsel %vm675_vm4, %v2282_v29, %v4156_v44 }
 0x324   : > { %v2520_v13 = vsel %vm675_vm4, %v2519_v6, %v4162_v38  ;;  %v2289_v38 = vsel %vm673_vm3, %v3974_v16, %v2256_v28 }
 0x325   : > { %v2458_v52 = vpop.permute.xlu0 %2457 }
 0x326   : > { %v2264_v1 = vpop.permute.xlu1 %2263  ;;  %v2512_v32 = vsel %vm673_vm3, %v4018_v27, %v2458_v52  ;;  %v2290_v27 = vsel %vm675_vm4, %v2289_v38, %v4146_v42 }
 0x327   : > { %v2513_v34 = vsel %vm675_vm4, %v2512_v32, %v4180_v12  ;;  %v2291_v28 = vsel %vm677_vm5, %v2290_v27, %v2264_v1 }
 0x328   : > { %v2292_v42 = vsel %vm679_vm6, %v2291_v28, %v4184_v8 }
 0x329   : > { %v2236_v62 = vpop.permute.xlu0 %2235 }
 0x32a   : > { %v2494_v48 = vpop.permute.xlu1 %2493 }
 0x32b   : > { %v2521_v41 = vsel %vm677_vm5, %v2520_v13, %v2494_v48  ;;  %v2284_v48 = vsel %vm677_vm5, %v2283_v58, %v2236_v62 }
 0x32c   : > { %v2522_v51 = vsel %vm679_vm6, %v2521_v41, %v4194_v24  ;;  %v2285_v44 = vsel %vm679_vm6, %v2284_v48, %v4190_v22 }
 0x32d   : > { %v2466_v21 = vpop.permute.xlu0 %2465 }
 0x32e   : > { %v1574_v15 = vpop.permute.xlu1 %1573  ;;  %v2514_v52 = vsel %vm677_vm5, %v2513_v34, %v2466_v21 }
 0x32f   : > { %v1607_v58 = vsel %vm673_vm3, %v4072_v55, %v1574_v15 }
 0x331   : > { %v2244_v57 = vpop.permute.xlu0 %2243 }
 0x332   : > { %v4299_v20 = vpop.permute.xlu1 %1811  ;;  %v2286_v12 = vsel %vm681_vm7, %v2285_v44, %v2244_v57  ;;  %v4552_v44 = vld [vmem:[#allocation35_spill] sm:$0xff] }
 0x333   : > { %v2287_v22 = vsel %vm683_vm8, %v2286_v12, %v4233_v4  ;;  %v4547_v4 = vld [vmem:[#allocation32_spill] sm:$0xff] }
 0x335   : > { %v892_v35 = vpop.permute.xlu0 %891 }
 0x336   : > { %v2272_v47 = vpop.permute.xlu1 %2271 }
 0x337   : > { %v2293_v1 = vsel %vm681_vm7, %v2292_v42, %v2272_v47 }
 0x339   : > { %v2474_v33 = vpop.permute.xlu0 %2473 }
 0x33a   : > { %v2502_v3 = vpop.permute.xlu1 %2501 }
 0x33b   : > { %v2523_v17 = vsel %vm681_vm7, %v2522_v51, %v2502_v3 }
 0x33c   : > { %v2524_v24 = vsel %vm683_vm8, %v2523_v17, %v4238_v50  ;;  %v2515_v50 = vsel %vm679_vm6, %v2514_v52, %v4223_v40  ;;  %v2294_v40 = vsel %vm683_vm8, %v2293_v1, %v4227_v49  ;;  %v4548_v17 = vld [vmem:[#allocation6_spill] sm:$0xff]  ;;  %v1837_v49 = vsel %vm673_vm3, %v3995_v11, %v1804_v59  ;;  %v4554_v1 = vld [vmem:[#allocation5_spill] sm:$0xff] }
 0x33d   : > { %v2252_v43 = vpop.permute.xlu0 %2251  ;;  %v2516_v21 = vsel %vm681_vm7, %v2515_v50, %v2474_v33  ;;  %v4550_v52 = vld [vmem:[#allocation34_spill] sm:$0xff]  ;;  %v1838_v55 = vsel %vm675_vm4, %v1837_v49, %v4172_v30  ;;  %v2535_v49 = vrot.slane %v4056_v39, 4 }
 0x33e   : > { %v1122_v10 = vpop.permute.xlu1 %1121  ;;  %v2288_v41 = vsel %vm685_vm9, %v2287_v22, %v2252_v43  ;;  %v2517_v57 = vsel %vm683_vm8, %v2516_v21, %v4265_v54  ;;  %v1362_v43 = vsel %vm673_vm3, %v4548_v17, %v4547_v4  ;;  %v4553_v21 = vld [vmem:[#allocation27_spill] sm:$0xff]  ;;  %v4558_v4 = vld [vmem:[#allocation29_spill] sm:$0xff] }
 0x33f   : > { %v2546_v51 = vrot.slane %v2288_v41, 4  ;;  %v1155_v34 = vsel %vm673_vm3, %v4132_v2, %v1122_v10  ;;  %v1839_v2 = vsel %vm677_vm5, %v1838_v55, %v4299_v20  ;;  %v674_v22 = vsel %vm673_vm3, %v4554_v1, %v4553_v21 }
 0x340   : > { %v1156_v10 = vsel %vm675_vm4, %v1155_v34, %v4250_v31  ;;  %v1840_v20 = vsel %vm679_vm6, %v1839_v2, %v4215_v36  ;;  %v4561_v2 = vld [vmem:[#allocation37_spill] sm:$0xff] }
 0x341   : > { %v2510_v25 = vpop.permute.xlu0 %2509  ;;  %v2557_v48 = vsel %vm2550_vm10, %v4090_v56, %v2546_v51  ;;  %v1608_v56 = vsel %vm675_vm4, %v1607_v58, %v4204_v60  ;;  %v4557_v51 = vld [vmem:[#allocation24_spill] sm:$0xff] }
 0x342   : > { %v1582_v6 = vpop.permute.xlu1 %1581  ;;  %v2525_v16 = vsel %vm685_vm9, %v2524_v24, %v2510_v25  ;;  %v4549_v25 = vld [vmem:[#allocation28_spill] sm:$0xff] }
 0x343   : > { %2711 = vmatprep.subr.msk.mxu0 %vm2550_vm10, %v2525_v16  ;;  %v1363_v24 = vsel %vm675_vm4, %v1362_v43, %v4549_v25  ;;  %v1609_v15 = vsel %vm677_vm5, %v1608_v56, %v1582_v6  ;;  %v4551_v16 = vld [vmem:[#allocation30_spill] sm:$0xff] }
 0x344   : > { %v1364_v11 = vsel %vm677_vm5, %v1363_v24, %v4550_v52  ;;  %v1610_v31 = vsel %vm679_vm6, %v1609_v15, %v4255_v37  ;;  %v4556_v37 = vld [vmem:[#allocation36_spill] sm:$0xff]  ;;  %v4559_v24 = vld [vmem:[#allocation26_spill] sm:$0xff]  ;;  %v692_v15 = vsel %vm683_vm8, %v4050_v7, %v4561_v2 }
 0x345   : > { %v4333_v62 = vpop.permute.xlu0 %638  ;;  %v1365_v30 = vsel %vm679_vm6, %v1364_v11, %v4551_v16 }
 0x346   : > { %v1820_v13 = vpop.permute.xlu1 %1819  ;;  %v1366_v12 = vsel %vm681_vm7, %v1365_v30, %v4552_v44 }
 0x349   : > { %v2482_v3 = vpop.permute.xlu0 %2481 }
 0x34a   : > { %v2280_v29 = vpop.permute.xlu1 %2279  ;;  %v2518_v8 = vsel %vm685_vm9, %v2517_v57, %v2482_v3  ;;  %v4555_v3 = vld [vmem:[#allocation25_spill] sm:$0xff] }
 0x34b   : > { %v2295_v33 = vsel %vm685_vm9, %v2294_v40, %v2280_v29  ;;  %2712 = vmatpush1.msk.msra.mxu0 %vm2550_vm10, %v2518_v8  ;;  %v1367_v36 = vsel %vm683_vm8, %v1366_v12, %v4555_v3 }
 0x34c   : > { %v2547_v47 = vrot.slane %v2295_v33, 4  ;;  %v1368_v40 = vsel %vm685_vm9, %v1367_v36, %v4556_v37  ;;  %v676_v33 = vsel %vm675_vm4, %v674_v22, %v4557_v51 }
 0x34d   : > { %v908_v32 = vpop.permute.xlu0 %907  ;;  %v678_v17 = vsel %vm677_vm5, %v676_v33, %v4558_v4 }
 0x34e   : > { %v900_v38 = vpop.permute.xlu1 %899  ;;  %v2558_v54 = vsel %vm2550_vm10, %v4077_v5, %v2547_v47  ;;  %v925_v5 = vsel %vm673_vm3, %v4102_v19, %v892_v35 }
 0x34f   : > { %2594 = vmatprep.subr.mxu0 %v2558_v54  ;;  %v926_v19 = vsel %vm675_vm4, %v925_v5, %v4244_v53  ;;  %v1841_v53 = vsel %vm681_vm7, %v1840_v20, %v1820_v13  ;;  %v680_v5 = vsel %vm679_vm6, %v678_v17, %v4559_v24 }
 0x350   : > { %2595 = vmatpush1.msra.mxu0 %v2557_v48  ;;  %v927_v28 = vsel %vm677_vm5, %v926_v19, %v900_v38  ;;  %v2534_v38 = vrot.slane %v1368_v40, 4  ;;  %v1153_v48 = vsel %vm683_vm8, %v4284_v23, %v4150_v61  ;;  %v2528_v23 = vrot.slane %v4291_v0, 4 }
 0x351   : > { %v1138_v27 = vpop.permute.xlu0 %1137  ;;  %v928_v41 = vsel %vm679_vm6, %v927_v28, %v4268_v63 }
 0x352   : > { %v1130_v59 = vpop.permute.xlu1 %1129  ;;  %v929_v63 = vsel %vm681_vm7, %v928_v41, %v908_v32 }
 0x353   : > { %v1157_v35 = vsel %vm677_vm5, %v1156_v10, %v1130_v59  ;;  %v930_v58 = vsel %vm683_vm8, %v929_v63, %v4279_v45  ;;  %v4560_v45 = vld [vmem:[#allocation31_spill] sm:$0xff] }
 0x354   : > { %v1158_v50 = vsel %vm679_vm6, %v1157_v35, %v4271_v9  ;;  %v1842_v9 = vsel %vm683_vm8, %v1841_v53, %v4260_v18  ;;  %v682_v52 = vsel %vm681_vm7, %v680_v5, %v4560_v45 }
 0x355   : > { %v1598_v60 = vpop.permute.xlu0 %1597  ;;  %v1159_v8 = vsel %vm681_vm7, %v1158_v50, %v1138_v27  ;;  %v684_v11 = vsel %vm683_vm8, %v682_v52, %v4333_v62  ;;  %v2559_v62 = vld [vmem:[%s4456_s3] sm:$0xff] }
 0x356   : > { %v1590_v6 = vpop.permute.xlu1 %1589 }
 0x357   : > { %v1611_v42 = vsel %vm681_vm7, %v1610_v31, %v1590_v6 }
 0x358   : > { %v1612_v13 = vsel %vm683_vm8, %v1611_v42, %v4274_v26  ;;  %v1160_v26 = vsel %vm683_vm8, %v1159_v8, %v4286_v46 }
 0x359   : > { %v916_v57 = vpop.permute.xlu0 %915  ;;  %v1613_v18 = vsel %vm685_vm9, %v1612_v13, %v1598_v60 }
 0x35a   : > { %v1828_v29 = vpop.permute.xlu1 %1827  ;;  %v931_v46 = vsel %vm685_vm9, %v930_v58, %v916_v57 }
 0x35b   : > { %v1843_v47 = vsel %vm685_vm9, %v1842_v9, %v1828_v29  ;;  %v2529_v56 = vrot.slane %v931_v46, 4 }
 0x35c   : > { %v2541_v43 = vrot.slane %v1843_v47, 4 }
 0x35d   : > { %v1146_v54 = vpop.permute.xlu0 %1145 }
 0x35e   : > { %v1161_v32 = vsel %vm685_vm9, %v1160_v26, %v1146_v54  ;;  %v1118_v34 = vpop.permute.xlu1 %1117  ;;  %v2556_v25 = vsel %vm2550_vm10, %v1613_v18, %v2541_v43 }
 0x35f   : > { %v1154_v27 = vsel %vm685_vm9, %v1153_v48, %v1118_v34  ;;  %2596 = vmatprep.subr.mxu0 %v2556_v25  ;;  %v2554_v39 = vsel %vm2550_vm10, %v1161_v32, %v2535_v49 }
 0x360   : > { %2597 = vmatpush1.msra.mxu0 %v4297_v14  ;;  %v2553_v61 = vsel %vm2550_vm10, %v1154_v27, %v2534_v38 }
 0x361   : > { %2598 = vmatprep.subr.mxu0 %v2554_v39  ;;  %v643_v55 = vpop.permute.xlu0 %642 }
 0x362   : > { %v686_v59 = vsel %vm685_vm9, %v684_v11, %v643_v55  ;;  %2599 = vmatpush1.msra.mxu0 %v2553_v61  ;;  %v671_v10 = vpop.permute.xlu1 %670 }
 0x363   : > { %v693_v14 = vsel %vm685_vm9, %v692_v15, %v671_v10  ;;  %v2551_v19 = vsel %vm2550_vm10, %v686_v59, %v2528_v23 }
 0x364   : > { %v2552_v0 = vsel %vm2550_vm10, %v693_v14, %v2529_v56 }
 0x365   : > { %2600 = vmatprep.subr.mxu0 %v2552_v0 }
 0x366   : > { %2601 = vmatpush1.msra.mxu0 %v2551_v19 }
 0x367   : > { %2713 = vmatmul.mubr.msk.f32.vlgmr.msra.gmra.mxu0 %vm2560_vm11, %v2559_v62 }
 0x427   : > { %v2636_v7 = vpop.f32.mrf.mxu0 }
 0x428   : > { %2641 = vst [vmem:[%s197_s14] sm:$0xff] %v2636_v7 }
 0x429   : > { %v2638_v35 = vpop.f32.mrf.mxu0 }
 0x42a   : > { %2642 = vst [vmem:[%s197_s14 + $0x8] sm:$0xff] %v2638_v35 }
 0x42b PF: > { %s14_s15 = sadd.s32 1, %s2768_s15  }
 0x42c   : > { %p11_p4 = scmp.ge.s32.totalorder %s14_s15, 4  }
 0x42e   :  { %13 = sbr.rel (!%p11_p4) target bundleno = 1 (0x1), region = 66 }

</bundles_post_ra>
